<compile_context>
chip_gen: v5e
topology: v5e:2x2
jax: 0.10.0
libtpu: 0.0.40
codegen_flags: <defaults>
</compile_context>

<pallas_src>
import jax
import jax.numpy as jnp
import numpy as np
from jax.experimental import pallas as pl
from jax.experimental.pallas import tpu as pltpu


# ---------------- fused decoder kernel (fc_hc + LSTM + MDN head) -------------

def make_decoder_kernel(S, B, L, H):

    def lstm_cell(gates, c_prev):
        # gate layout [i, f, o | g]: sigmoid over contiguous 3H, tanh over H.
        sig = jax.nn.sigmoid(gates[:, :3 * H])
        g_g = jnp.tanh(gates[:, 3 * H:])
        i_g = sig[:, 0 * H:1 * H]
        f_g = sig[:, 1 * H:2 * H]
        o_g = sig[:, 2 * H:3 * H]
        c_new = f_g * c_prev + i_g * g_g
        h_new = o_g * jnp.tanh(c_new)
        return h_new, c_new

    def kernel(*refs):
        # ---- unpack refs: inputs then outputs ----
        (z_ref, wfc_ref, bfc_ref, x_ref, wih0_ref, b0_ref, whh0_ref) = refs[:7]
        idx = 7
        upper_refs = []
        for _ in range(L - 1):
            upper_refs.append((refs[idx], refs[idx + 1], refs[idx + 2]))
            idx += 3
        whead_ref, bhead_ref = refs[idx], refs[idx + 1]
        idx += 2
        head_ref, hf_ref, cf_ref = refs[idx], refs[idx + 1], refs[idx + 2]

        # ---- fc_hc prologue: initial hidden / cell from z (one MXU pass) ----
        hc = jnp.tanh(
            jnp.dot(z_ref[...], wfc_ref[...], preferred_element_type=jnp.float32)
            + bfc_ref[...])                                    # (B, 2*L*H)
        hs = [hc[:, l * H:(l + 1) * H] for l in range(L)]
        cs = [hc[:, (L + l) * H:(L + l + 1) * H] for l in range(L)]

        # ---- hoist loop-invariant operands into vreg-resident values ----
        whh0 = whh0_ref[...]                                   # (H, 4H)
        upper_w = [(w_ih[...], w_hh[...], b[...]) for (w_ih, w_hh, b) in upper_refs]

        # ---- layer-0 input projection for ALL timesteps: one MXU pass,
        #      kept in registers (S*B x 4H is only 2 vregs here) ----
        xg = (jnp.dot(x_ref[...], wih0_ref[...],
                      preferred_element_type=jnp.float32)
              + b0_ref[...])                                   # (S*B, 4H)

        # ---- serial recurrence, fully unrolled (S small; see TODO above) ----
        htops = []
        for t in range(S):
            # layer 0: input contribution precomputed; only h @ W_hh in chain
            gates0 = xg[t * B:(t + 1) * B, :] + jnp.dot(
                hs[0], whh0, preferred_element_type=jnp.float32)
            hs[0], cs[0] = lstm_cell(gates0, cs[0])
            inp = hs[0]
            for l in range(1, L):
                w_ih_l, w_hh_l, b_l = upper_w[l - 1]
                # two back-to-back MXU pushes; no lane-axis concatenate
                gates = (jnp.dot(inp, w_ih_l, preferred_element_type=jnp.float32)
                         + jnp.dot(hs[l], w_hh_l,
                                   preferred_element_type=jnp.float32)
                         + b_l)
                hs[l], cs[l] = lstm_cell(gates, cs[l])
                inp = hs[l]
            htops.append(inp)   # collected in registers; stored once below

        for l in range(L):
            hf_ref[l] = hs[l]
            cf_ref[l] = cs[l]

        # ---- fused, lane-dense MDN head: one MXU pass + one dense store ----
        h_top = jnp.concatenate(htops, axis=0)                 # (S*B, H)
        head_ref[...] = (jnp.dot(h_top, whead_ref[...],
                                 preferred_element_type=jnp.float32)
                         + bhead_ref[...])                     # (S*B, 128-padded)

    return kernel


# ------------------------------- Wrapper --------------------------------------

def sketch_rnn_decoder(inputs, z, params, *, n_layers, hidden_dim, output_dim,
                       n_gaussians):
    S, B, Din = inputs.shape
    L, H, OD, NG = n_layers, hidden_dim, output_dim, n_gaussians
    OG = OD * NG
    K_head = max(128, pl.cdiv(3 * OG, 128) * 128)     # lane-dense head width

    def reorder(w):
        # PyTorch gate order [i, f, g, o] -> kernel order [i, f, o, g]
        return jnp.concatenate([w[:H], w[H:2 * H], w[3 * H:], w[2 * H:3 * H]],
                               axis=0)

    # fc_hc
    w_fc, b_fc = params['fc_hc']                      # [2LH, Z], [2LH]
    wfc_t = w_fc.T                                    # (Z, 2LH)
    bfc = b_fc[None, :]

    # layer 0: W_ih separate (input projection hoisted out of the recurrence)
    w_ih0, w_hh0, b_ih0, b_hh0 = params['lstm'][0]
    wih0_t = reorder(w_ih0).T                         # (Din, 4H)
    whh0_t = reorder(w_hh0).T                         # (H, 4H)
    b0 = reorder(b_ih0 + b_hh0)[None, :]

    # layers >= 1: keep W_ih / W_hh separate (two dots, no lane concat)
    upper_args = []
    for l in range(1, L):
        w_ih, w_hh, b_ih, b_hh = params['lstm'][l]
        upper_args += [reorder(w_ih).T, reorder(w_hh).T,
                       reorder(b_ih + b_hh)[None, :]]

    # fused MDN head weights [mu | sigma | pi], zero-padded to K_head lanes
    w_mu, b_mu = params['mu']
    w_sg, b_sg = params['sigma']
    w_pi, b_pi = params['pi']
    w_head = jnp.concatenate([w_mu.T, w_sg.T, w_pi.T], axis=1)     # (H, 3*OG)
    w_head = jnp.pad(w_head, ((0, 0), (0, K_head - 3 * OG)))
    b_head = jnp.pad(jnp.concatenate([b_mu, b_sg, b_pi]),
                     (0, K_head - 3 * OG))[None, :]

    x_flat = inputs.reshape(S * B, Din)

    out_shapes = [
        jax.ShapeDtypeStruct((S * B, K_head), jnp.float32),   # fused head
        jax.ShapeDtypeStruct((L, B, H), jnp.float32),         # hidden
        jax.ShapeDtypeStruct((L, B, H), jnp.float32),         # cell
    ]

    kernel = make_decoder_kernel(S, B, L, H)
    head, h_f, c_f = pl.pallas_call(kernel, out_shape=out_shapes)(
        z, wfc_t, bfc, x_flat, wih0_t, b0, whh0_t, *upper_args, w_head, b_head)

    # wrapper-side (plain XLA) split of the lane-dense head output:
    # mu / exp(sigma) / softmax over the n_gaussians axis, matching torch.
    mu = head[:, 0 * OG:1 * OG].reshape(S, B, OD, NG)
    sigma = jnp.exp(head[:, 1 * OG:2 * OG]).reshape(S, B, OD, NG)
    pi = jax.nn.softmax(head[:, 2 * OG:3 * OG].reshape(S, B, OD, NG), axis=3)
    # NOTE: the torch module's NaN-check / torch.save debug branch is host-side
    # debug I/O and is not representable in a TPU kernel.
    return (pi, mu, sigma), (h_f, c_f)


# --------------------------- Params / reference -------------------------------

def init_params(key, Z, Din, H, L, OD, NG):
    def uniform(k, shape, bound):
        return jax.random.uniform(k, shape, jnp.float32, -bound, bound)

    keys = iter(jax.random.split(key, 64))
    params = {}
    k_fc = 1.0 / np.sqrt(Z)
    params['fc_hc'] = (uniform(next(keys), (2 * L * H, Z), k_fc),
                       uniform(next(keys), (2 * L * H,), k_fc))
    k_l = 1.0 / np.sqrt(H)
    lstm = []
    for l in range(L):
        in_f = Din if l == 0 else H
        lstm.append((uniform(next(keys), (4 * H, in_f), k_l),
                     uniform(next(keys), (4 * H, H), k_l),
                     uniform(next(keys), (4 * H,), k_l),
                     uniform(next(keys), (4 * H,), k_l)))
    params['lstm'] = lstm
    for name in ('mu', 'sigma', 'pi'):
        params[name] = (uniform(next(keys), (OD * NG, H), k_l),
                        uniform(next(keys), (OD * NG,), k_l))
    return params


def reference(inputs, z, params, L, H, OD, NG):
    hp = jax.lax.Precision.HIGHEST
    w_fc, b_fc = params['fc_hc']
    B = z.shape[0]
    S = inputs.shape[0]
    hc = jnp.tanh(jnp.dot(z, w_fc.T, precision=hp) + b_fc)
    hc = hc.reshape(B, 2 * L, H).transpose(1, 0, 2)
    h = [hc[l] for l in range(L)]
    c = [hc[L + l] for l in range(L)]
    outs = []
    for t in range(S):
        x = inputs[t]
        for l in range(L):
            w_ih, w_hh, b_ih, b_hh = params['lstm'][l]
            g = (jnp.dot(x, w_ih.T, precision=hp) + b_ih
                 + jnp.dot(h[l], w_hh.T, precision=hp) + b_hh)
            i = jax.nn.sigmoid(g[:, :H])
            f = jax.nn.sigmoid(g[:, H:2 * H])
            gg = jnp.tanh(g[:, 2 * H:3 * H])
            o = jax.nn.sigmoid(g[:, 3 * H:])
            c[l] = f * c[l] + i * gg
            h[l] = o * jnp.tanh(c[l])
            x = h[l]
        outs.append(x)
    outs = jnp.stack(outs)
    w_mu, b_mu = params['mu']
    w_sg, b_sg = params['sigma']
    w_pi, b_pi = params['pi']
    mu = (jnp.dot(outs, w_mu.T, precision=hp) + b_mu).reshape(S, B, OD, NG)
    sg = jnp.exp((jnp.dot(outs, w_sg.T, precision=hp) + b_sg).reshape(S, B, OD, NG))
    pi = jax.nn.softmax(
        (jnp.dot(outs, w_pi.T, precision=hp) + b_pi).reshape(S, B, OD, NG), axis=3)
    return (pi, mu, sg), (jnp.stack(h), jnp.stack(c))


# ---------------------------------- Main ---------------------------------------

if __name__ == "__main__":
    B, S = 2, 8            # batch_size, seq_len
    Z, OD, NG = 16, 5, 4   # z_dim, output_dim, n_gaussians
    H, L = 32, 2           # decoder_h_dim, n_layers
    Din = Z + OD

    root = jax.random.PRNGKey(0)
    kp, kx, kz = jax.random.split(root, 3)
    params = init_params(kp, Z, Din, H, L, OD, NG)
    inputs = jax.random.normal(kx, (S, B, Din), jnp.float32)
    z = jax.random.normal(kz, (B, Z), jnp.float32)

    (pi, mu, sigma), (h, c) = sketch_rnn_decoder(
        inputs, z, params, n_layers=L, hidden_dim=H, output_dim=OD, n_gaussians=NG)
    jax.block_until_ready((pi, mu, sigma, h, c))

    (pi_r, mu_r, sg_r), (h_r, c_r) = reference(inputs, z, params, L, H, OD, NG)
    for got, want, name in ((pi, pi_r, 'pi'), (mu, mu_r, 'mu'), (sigma, sg_r, 'sigma'),
                            (h, h_r, 'hidden'), (c, c_r, 'cell')):
        np.testing.assert_allclose(np.asarray(got), np.asarray(want),
                                   rtol=2e-3, atol=2e-3, err_msg=name)

    print("KERNEL_OK")
</pallas_src>

<mosaic_0001>
module attributes {stable_mosaic.version = 11 : i64} {
  func.func @kernel(%arg0: memref<2x16xf32, #tpu.memory_space<vmem>>, %arg1: memref<16x128xf32, #tpu.memory_space<vmem>>, %arg2: memref<1x128xf32, #tpu.memory_space<vmem>>, %arg3: memref<16x21xf32, #tpu.memory_space<vmem>>, %arg4: memref<21x128xf32, #tpu.memory_space<vmem>>, %arg5: memref<1x128xf32, #tpu.memory_space<vmem>>, %arg6: memref<32x128xf32, #tpu.memory_space<vmem>>, %arg7: memref<32x128xf32, #tpu.memory_space<vmem>>, %arg8: memref<32x128xf32, #tpu.memory_space<vmem>>, %arg9: memref<1x128xf32, #tpu.memory_space<vmem>>, %arg10: memref<32x128xf32, #tpu.memory_space<vmem>>, %arg11: memref<1x128xf32, #tpu.memory_space<vmem>>, %arg12: memref<16x128xf32, #tpu.memory_space<vmem>>, %arg13: memref<2x2x32xf32, #tpu.memory_space<vmem>>, %arg14: memref<2x2x32xf32, #tpu.memory_space<vmem>>) attributes {dimension_semantics = [], scalar_prefetch = 0 : i64, scratch_operands = 0 : i64, tpu.core_type = #tpu.core_type<tc>} {
    %c0 = arith.constant 0 : index
    %c0_0 = arith.constant 0 : index
    %0 = vector.load %arg0[%c0, %c0_0] : memref<2x16xf32, #tpu.memory_space<vmem>>, vector<2x16xf32>
    %c0_1 = arith.constant 0 : index
    %c0_2 = arith.constant 0 : index
    %1 = vector.load %arg1[%c0_1, %c0_2] : memref<16x128xf32, #tpu.memory_space<vmem>>, vector<16x128xf32>
    %cst = arith.constant dense<0.000000e+00> : vector<2x128xf32>
    %2 = tpu.matmul %0, %1, %cst {dimension_numbers = #tpu.dot_dimension_numbers<[1], [0], [0], [1], [0, 0, 1, 1], [], []>} : vector<2x16xf32>, vector<16x128xf32>, vector<2x128xf32> -> vector<2x128xf32>
    %c0_3 = arith.constant 0 : index
    %c0_4 = arith.constant 0 : index
    %3 = vector.load %arg2[%c0_3, %c0_4] : memref<1x128xf32, #tpu.memory_space<vmem>>, vector<1x128xf32>
    %4 = vector.broadcast %3 : vector<1x128xf32> to vector<2x128xf32>
    %5 = arith.addf %2, %4 : vector<2x128xf32>
    %6 = math.tanh %5 : vector<2x128xf32>
    %7 = vector.extract_strided_slice %6 {offsets = [0, 0], sizes = [2, 32], strides = [1, 1]} : vector<2x128xf32> to vector<2x32xf32>
    %8 = vector.extract_strided_slice %6 {offsets = [0, 32], sizes = [2, 32], strides = [1, 1]} : vector<2x128xf32> to vector<2x32xf32>
    %9 = vector.extract_strided_slice %6 {offsets = [0, 64], sizes = [2, 32], strides = [1, 1]} : vector<2x128xf32> to vector<2x32xf32>
    %10 = vector.extract_strided_slice %6 {offsets = [0, 96], sizes = [2, 32], strides = [1, 1]} : vector<2x128xf32> to vector<2x32xf32>
    %c0_5 = arith.constant 0 : index
    %c0_6 = arith.constant 0 : index
    %11 = vector.load %arg6[%c0_5, %c0_6] : memref<32x128xf32, #tpu.memory_space<vmem>>, vector<32x128xf32>
    %c0_7 = arith.constant 0 : index
    %c0_8 = arith.constant 0 : index
    %12 = vector.load %arg7[%c0_7, %c0_8] : memref<32x128xf32, #tpu.memory_space<vmem>>, vector<32x128xf32>
    %c0_9 = arith.constant 0 : index
    %c0_10 = arith.constant 0 : index
    %13 = vector.load %arg8[%c0_9, %c0_10] : memref<32x128xf32, #tpu.memory_space<vmem>>, vector<32x128xf32>
    %c0_11 = arith.constant 0 : index
    %c0_12 = arith.constant 0 : index
    %14 = vector.load %arg9[%c0_11, %c0_12] : memref<1x128xf32, #tpu.memory_space<vmem>>, vector<1x128xf32>
    %c0_13 = arith.constant 0 : index
    %c0_14 = arith.constant 0 : index
    %15 = vector.load %arg3[%c0_13, %c0_14] : memref<16x21xf32, #tpu.memory_space<vmem>>, vector<16x21xf32>
    %c0_15 = arith.constant 0 : index
    %c0_16 = arith.constant 0 : index
    %16 = vector.load %arg4[%c0_15, %c0_16] : memref<21x128xf32, #tpu.memory_space<vmem>>, vector<21x128xf32>
    %cst_17 = arith.constant dense<0.000000e+00> : vector<16x128xf32>
    %17 = tpu.matmul %15, %16, %cst_17 {dimension_numbers = #tpu.dot_dimension_numbers<[1], [0], [0], [1], [0, 0, 1, 1], [], []>} : vector<16x21xf32>, vector<21x128xf32>, vector<16x128xf32> -> vector<16x128xf32>
    %c0_18 = arith.constant 0 : index
    %c0_19 = arith.constant 0 : index
    %18 = vector.load %arg5[%c0_18, %c0_19] : memref<1x128xf32, #tpu.memory_space<vmem>>, vector<1x128xf32>
    %19 = vector.broadcast %18 : vector<1x128xf32> to vector<16x128xf32>
    %20 = arith.addf %17, %19 : vector<16x128xf32>
    %21 = vector.extract_strided_slice %20 {offsets = [0, 0], sizes = [2, 128], strides = [1, 1]} : vector<16x128xf32> to vector<2x128xf32>
    %cst_20 = arith.constant dense<0.000000e+00> : vector<2x128xf32>
    %22 = tpu.matmul %7, %11, %cst_20 {dimension_numbers = #tpu.dot_dimension_numbers<[1], [0], [0], [1], [0, 0, 1, 1], [], []>} : vector<2x32xf32>, vector<32x128xf32>, vector<2x128xf32> -> vector<2x128xf32>
    %23 = arith.addf %21, %22 : vector<2x128xf32>
    %24 = vector.extract_strided_slice %23 {offsets = [0, 0], sizes = [2, 96], strides = [1, 1]} : vector<2x128xf32> to vector<2x96xf32>
    %25 = arith.negf %24 : vector<2x96xf32>
    %26 = math.exp %25 : vector<2x96xf32>
    %cst_21 = arith.constant 1.000000e+00 : f32
    %27 = vector.broadcast %cst_21 : f32 to vector<2x96xf32>
    %28 = arith.addf %27, %26 : vector<2x96xf32>
    %29 = arith.divf %27, %28 : vector<2x96xf32>
    %30 = vector.extract_strided_slice %23 {offsets = [0, 96], sizes = [2, 32], strides = [1, 1]} : vector<2x128xf32> to vector<2x32xf32>
    %31 = math.tanh %30 : vector<2x32xf32>
    %32 = vector.extract_strided_slice %29 {offsets = [0, 0], sizes = [2, 32], strides = [1, 1]} : vector<2x96xf32> to vector<2x32xf32>
    %33 = vector.extract_strided_slice %29 {offsets = [0, 32], sizes = [2, 32], strides = [1, 1]} : vector<2x96xf32> to vector<2x32xf32>
    %34 = vector.extract_strided_slice %29 {offsets = [0, 64], sizes = [2, 32], strides = [1, 1]} : vector<2x96xf32> to vector<2x32xf32>
    %35 = arith.mulf %33, %9 : vector<2x32xf32>
    %36 = arith.mulf %32, %31 : vector<2x32xf32>
    %37 = arith.addf %35, %36 : vector<2x32xf32>
    %38 = math.tanh %37 : vector<2x32xf32>
    %39 = arith.mulf %34, %38 : vector<2x32xf32>
    %cst_22 = arith.constant dense<0.000000e+00> : vector<2x128xf32>
    %40 = tpu.matmul %39, %12, %cst_22 {dimension_numbers = #tpu.dot_dimension_numbers<[1], [0], [0], [1], [0, 0, 1, 1], [], []>} : vector<2x32xf32>, vector<32x128xf32>, vector<2x128xf32> -> vector<2x128xf32>
    %cst_23 = arith.constant dense<0.000000e+00> : vector<2x128xf32>
    %41 = tpu.matmul %8, %13, %cst_23 {dimension_numbers = #tpu.dot_dimension_numbers<[1], [0], [0], [1], [0, 0, 1, 1], [], []>} : vector<2x32xf32>, vector<32x128xf32>, vector<2x128xf32> -> vector<2x128xf32>
    %42 = arith.addf %40, %41 : vector<2x128xf32>
    %43 = vector.broadcast %14 : vector<1x128xf32> to vector<2x128xf32>
    %44 = arith.addf %42, %43 : vector<2x128xf32>
    %45 = vector.extract_strided_slice %44 {offsets = [0, 0], sizes = [2, 96], strides = [1, 1]} : vector<2x128xf32> to vector<2x96xf32>
    %46 = arith.negf %45 : vector<2x96xf32>
    %47 = math.exp %46 : vector<2x96xf32>
    %cst_24 = arith.constant 1.000000e+00 : f32
    %48 = vector.broadcast %cst_24 : f32 to vector<2x96xf32>
    %49 = arith.addf %48, %47 : vector<2x96xf32>
    %50 = arith.divf %48, %49 : vector<2x96xf32>
    %51 = vector.extract_strided_slice %44 {offsets = [0, 96], sizes = [2, 32], strides = [1, 1]} : vector<2x128xf32> to vector<2x32xf32>
    %52 = math.tanh %51 : vector<2x32xf32>
    %53 = vector.extract_strided_slice %50 {offsets = [0, 0], sizes = [2, 32], strides = [1, 1]} : vector<2x96xf32> to vector<2x32xf32>
    %54 = vector.extract_strided_slice %50 {offsets = [0, 32], sizes = [2, 32], strides = [1, 1]} : vector<2x96xf32> to vector<2x32xf32>
    %55 = vector.extract_strided_slice %50 {offsets = [0, 64], sizes = [2, 32], strides = [1, 1]} : vector<2x96xf32> to vector<2x32xf32>
    %56 = arith.mulf %54, %10 : vector<2x32xf32>
    %57 = arith.mulf %53, %52 : vector<2x32xf32>
    %58 = arith.addf %56, %57 : vector<2x32xf32>
    %59 = math.tanh %58 : vector<2x32xf32>
    %60 = arith.mulf %55, %59 : vector<2x32xf32>
    %61 = vector.extract_strided_slice %20 {offsets = [2, 0], sizes = [2, 128], strides = [1, 1]} : vector<16x128xf32> to vector<2x128xf32>
    %cst_25 = arith.constant dense<0.000000e+00> : vector<2x128xf32>
    %62 = tpu.matmul %39, %11, %cst_25 {dimension_numbers = #tpu.dot_dimension_numbers<[1], [0], [0], [1], [0, 0, 1, 1], [], []>} : vector<2x32xf32>, vector<32x128xf32>, vector<2x128xf32> -> vector<2x128xf32>
    %63 = arith.addf %61, %62 : vector<2x128xf32>
    %64 = vector.extract_strided_slice %63 {offsets = [0, 0], sizes = [2, 96], strides = [1, 1]} : vector<2x128xf32> to vector<2x96xf32>
    %65 = arith.negf %64 : vector<2x96xf32>
    %66 = math.exp %65 : vector<2x96xf32>
    %cst_26 = arith.constant 1.000000e+00 : f32
    %67 = vector.broadcast %cst_26 : f32 to vector<2x96xf32>
    %68 = arith.addf %67, %66 : vector<2x96xf32>
    %69 = arith.divf %67, %68 : vector<2x96xf32>
    %70 = vector.extract_strided_slice %63 {offsets = [0, 96], sizes = [2, 32], strides = [1, 1]} : vector<2x128xf32> to vector<2x32xf32>
    %71 = math.tanh %70 : vector<2x32xf32>
    %72 = vector.extract_strided_slice %69 {offsets = [0, 0], sizes = [2, 32], strides = [1, 1]} : vector<2x96xf32> to vector<2x32xf32>
    %73 = vector.extract_strided_slice %69 {offsets = [0, 32], sizes = [2, 32], strides = [1, 1]} : vector<2x96xf32> to vector<2x32xf32>
    %74 = vector.extract_strided_slice %69 {offsets = [0, 64], sizes = [2, 32], strides = [1, 1]} : vector<2x96xf32> to vector<2x32xf32>
    %75 = arith.mulf %73, %37 : vector<2x32xf32>
    %76 = arith.mulf %72, %71 : vector<2x32xf32>
    %77 = arith.addf %75, %76 : vector<2x32xf32>
    %78 = math.tanh %77 : vector<2x32xf32>
    %79 = arith.mulf %74, %78 : vector<2x32xf32>
    %cst_27 = arith.constant dense<0.000000e+00> : vector<2x128xf32>
    %80 = tpu.matmul %79, %12, %cst_27 {dimension_numbers = #tpu.dot_dimension_numbers<[1], [0], [0], [1], [0, 0, 1, 1], [], []>} : vector<2x32xf32>, vector<32x128xf32>, vector<2x128xf32> -> vector<2x128xf32>
    %cst_28 = arith.constant dense<0.000000e+00> : vector<2x128xf32>
    %81 = tpu.matmul %60, %13, %cst_28 {dimension_numbers = #tpu.dot_dimension_numbers<[1], [0], [0], [1], [0, 0, 1, 1], [], []>} : vector<2x32xf32>, vector<32x128xf32>, vector<2x128xf32> -> vector<2x128xf32>
    %82 = arith.addf %80, %81 : vector<2x128xf32>
    %83 = vector.broadcast %14 : vector<1x128xf32> to vector<2x128xf32>
    %84 = arith.addf %82, %83 : vector<2x128xf32>
    %85 = vector.extract_strided_slice %84 {offsets = [0, 0], sizes = [2, 96], strides = [1, 1]} : vector<2x128xf32> to vector<2x96xf32>
    %86 = arith.negf %85 : vector<2x96xf32>
    %87 = math.exp %86 : vector<2x96xf32>
    %cst_29 = arith.constant 1.000000e+00 : f32
    %88 = vector.broadcast %cst_29 : f32 to vector<2x96xf32>
    %89 = arith.addf %88, %87 : vector<2x96xf32>
    %90 = arith.divf %88, %89 : vector<2x96xf32>
    %91 = vector.extract_strided_slice %84 {offsets = [0, 96], sizes = [2, 32], strides = [1, 1]} : vector<2x128xf32> to vector<2x32xf32>
    %92 = math.tanh %91 : vector<2x32xf32>
    %93 = vector.extract_strided_slice %90 {offsets = [0, 0], sizes = [2, 32], strides = [1, 1]} : vector<2x96xf32> to vector<2x32xf32>
    %94 = vector.extract_strided_slice %90 {offsets = [0, 32], sizes = [2, 32], strides = [1, 1]} : vector<2x96xf32> to vector<2x32xf32>
    %95 = vector.extract_strided_slice %90 {offsets = [0, 64], sizes = [2, 32], strides = [1, 1]} : vector<2x96xf32> to vector<2x32xf32>
    %96 = arith.mulf %94, %58 : vector<2x32xf32>
    %97 = arith.mulf %93, %92 : vector<2x32xf32>
    %98 = arith.addf %96, %97 : vector<2x32xf32>
    %99 = math.tanh %98 : vector<2x32xf32>
    %100 = arith.mulf %95, %99 : vector<2x32xf32>
    %101 = vector.extract_strided_slice %20 {offsets = [4, 0], sizes = [2, 128], strides = [1, 1]} : vector<16x128xf32> to vector<2x128xf32>
    %cst_30 = arith.constant dense<0.000000e+00> : vector<2x128xf32>
    %102 = tpu.matmul %79, %11, %cst_30 {dimension_numbers = #tpu.dot_dimension_numbers<[1], [0], [0], [1], [0, 0, 1, 1], [], []>} : vector<2x32xf32>, vector<32x128xf32>, vector<2x128xf32> -> vector<2x128xf32>
    %103 = arith.addf %101, %102 : vector<2x128xf32>
    %104 = vector.extract_strided_slice %103 {offsets = [0, 0], sizes = [2, 96], strides = [1, 1]} : vector<2x128xf32> to vector<2x96xf32>
    %105 = arith.negf %104 : vector<2x96xf32>
    %106 = math.exp %105 : vector<2x96xf32>
    %cst_31 = arith.constant 1.000000e+00 : f32
    %107 = vector.broadcast %cst_31 : f32 to vector<2x96xf32>
    %108 = arith.addf %107, %106 : vector<2x96xf32>
    %109 = arith.divf %107, %108 : vector<2x96xf32>
    %110 = vector.extract_strided_slice %103 {offsets = [0, 96], sizes = [2, 32], strides = [1, 1]} : vector<2x128xf32> to vector<2x32xf32>
    %111 = math.tanh %110 : vector<2x32xf32>
    %112 = vector.extract_strided_slice %109 {offsets = [0, 0], sizes = [2, 32], strides = [1, 1]} : vector<2x96xf32> to vector<2x32xf32>
    %113 = vector.extract_strided_slice %109 {offsets = [0, 32], sizes = [2, 32], strides = [1, 1]} : vector<2x96xf32> to vector<2x32xf32>
    %114 = vector.extract_strided_slice %109 {offsets = [0, 64], sizes = [2, 32], strides = [1, 1]} : vector<2x96xf32> to vector<2x32xf32>
    %115 = arith.mulf %113, %77 : vector<2x32xf32>
    %116 = arith.mulf %112, %111 : vector<2x32xf32>
    %117 = arith.addf %115, %116 : vector<2x32xf32>
    %118 = math.tanh %117 : vector<2x32xf32>
    %119 = arith.mulf %114, %118 : vector<2x32xf32>
    %cst_32 = arith.constant dense<0.000000e+00> : vector<2x128xf32>
    %120 = tpu.matmul %119, %12, %cst_32 {dimension_numbers = #tpu.dot_dimension_numbers<[1], [0], [0], [1], [0, 0, 1, 1], [], []>} : vector<2x32xf32>, vector<32x128xf32>, vector<2x128xf32> -> vector<2x128xf32>
    %cst_33 = arith.constant dense<0.000000e+00> : vector<2x128xf32>
    %121 = tpu.matmul %100, %13, %cst_33 {dimension_numbers = #tpu.dot_dimension_numbers<[1], [0], [0], [1], [0, 0, 1, 1], [], []>} : vector<2x32xf32>, vector<32x128xf32>, vector<2x128xf32> -> vector<2x128xf32>
    %122 = arith.addf %120, %121 : vector<2x128xf32>
    %123 = vector.broadcast %14 : vector<1x128xf32> to vector<2x128xf32>
    %124 = arith.addf %122, %123 : vector<2x128xf32>
    %125 = vector.extract_strided_slice %124 {offsets = [0, 0], sizes = [2, 96], strides = [1, 1]} : vector<2x128xf32> to vector<2x96xf32>
    %126 = arith.negf %125 : vector<2x96xf32>
    %127 = math.exp %126 : vector<2x96xf32>
    %cst_34 = arith.constant 1.000000e+00 : f32
    %128 = vector.broadcast %cst_34 : f32 to vector<2x96xf32>
    %129 = arith.addf %128, %127 : vector<2x96xf32>
    %130 = arith.divf %128, %129 : vector<2x96xf32>
    %131 = vector.extract_strided_slice %124 {offsets = [0, 96], sizes = [2, 32], strides = [1, 1]} : vector<2x128xf32> to vector<2x32xf32>
    %132 = math.tanh %131 : vector<2x32xf32>
    %133 = vector.extract_strided_slice %130 {offsets = [0, 0], sizes = [2, 32], strides = [1, 1]} : vector<2x96xf32> to vector<2x32xf32>
    %134 = vector.extract_strided_slice %130 {offsets = [0, 32], sizes = [2, 32], strides = [1, 1]} : vector<2x96xf32> to vector<2x32xf32>
    %135 = vector.extract_strided_slice %130 {offsets = [0, 64], sizes = [2, 32], strides = [1, 1]} : vector<2x96xf32> to vector<2x32xf32>
    %136 = arith.mulf %134, %98 : vector<2x32xf32>
    %137 = arith.mulf %133, %132 : vector<2x32xf32>
    %138 = arith.addf %136, %137 : vector<2x32xf32>
    %139 = math.tanh %138 : vector<2x32xf32>
    %140 = arith.mulf %135, %139 : vector<2x32xf32>
    %141 = vector.extract_strided_slice %20 {offsets = [6, 0], sizes = [2, 128], strides = [1, 1]} : vector<16x128xf32> to vector<2x128xf32>
    %cst_35 = arith.constant dense<0.000000e+00> : vector<2x128xf32>
    %142 = tpu.matmul %119, %11, %cst_35 {dimension_numbers = #tpu.dot_dimension_numbers<[1], [0], [0], [1], [0, 0, 1, 1], [], []>} : vector<2x32xf32>, vector<32x128xf32>, vector<2x128xf32> -> vector<2x128xf32>
    %143 = arith.addf %141, %142 : vector<2x128xf32>
    %144 = vector.extract_strided_slice %143 {offsets = [0, 0], sizes = [2, 96], strides = [1, 1]} : vector<2x128xf32> to vector<2x96xf32>
    %145 = arith.negf %144 : vector<2x96xf32>
    %146 = math.exp %145 : vector<2x96xf32>
    %cst_36 = arith.constant 1.000000e+00 : f32
    %147 = vector.broadcast %cst_36 : f32 to vector<2x96xf32>
    %148 = arith.addf %147, %146 : vector<2x96xf32>
    %149 = arith.divf %147, %148 : vector<2x96xf32>
    %150 = vector.extract_strided_slice %143 {offsets = [0, 96], sizes = [2, 32], strides = [1, 1]} : vector<2x128xf32> to vector<2x32xf32>
    %151 = math.tanh %150 : vector<2x32xf32>
    %152 = vector.extract_strided_slice %149 {offsets = [0, 0], sizes = [2, 32], strides = [1, 1]} : vector<2x96xf32> to vector<2x32xf32>
    %153 = vector.extract_strided_slice %149 {offsets = [0, 32], sizes = [2, 32], strides = [1, 1]} : vector<2x96xf32> to vector<2x32xf32>
    %154 = vector.extract_strided_slice %149 {offsets = [0, 64], sizes = [2, 32], strides = [1, 1]} : vector<2x96xf32> to vector<2x32xf32>
    %155 = arith.mulf %153, %117 : vector<2x32xf32>
    %156 = arith.mulf %152, %151 : vector<2x32xf32>
    %157 = arith.addf %155, %156 : vector<2x32xf32>
    %158 = math.tanh %157 : vector<2x32xf32>
    %159 = arith.mulf %154, %158 : vector<2x32xf32>
    %cst_37 = arith.constant dense<0.000000e+00> : vector<2x128xf32>
    %160 = tpu.matmul %159, %12, %cst_37 {dimension_numbers = #tpu.dot_dimension_numbers<[1], [0], [0], [1], [0, 0, 1, 1], [], []>} : vector<2x32xf32>, vector<32x128xf32>, vector<2x128xf32> -> vector<2x128xf32>
    %cst_38 = arith.constant dense<0.000000e+00> : vector<2x128xf32>
    %161 = tpu.matmul %140, %13, %cst_38 {dimension_numbers = #tpu.dot_dimension_numbers<[1], [0], [0], [1], [0, 0, 1, 1], [], []>} : vector<2x32xf32>, vector<32x128xf32>, vector<2x128xf32> -> vector<2x128xf32>
    %162 = arith.addf %160, %161 : vector<2x128xf32>
    %163 = vector.broadcast %14 : vector<1x128xf32> to vector<2x128xf32>
    %164 = arith.addf %162, %163 : vector<2x128xf32>
    %165 = vector.extract_strided_slice %164 {offsets = [0, 0], sizes = [2, 96], strides = [1, 1]} : vector<2x128xf32> to vector<2x96xf32>
    %166 = arith.negf %165 : vector<2x96xf32>
    %167 = math.exp %166 : vector<2x96xf32>
    %cst_39 = arith.constant 1.000000e+00 : f32
    %168 = vector.broadcast %cst_39 : f32 to vector<2x96xf32>
    %169 = arith.addf %168, %167 : vector<2x96xf32>
    %170 = arith.divf %168, %169 : vector<2x96xf32>
    %171 = vector.extract_strided_slice %164 {offsets = [0, 96], sizes = [2, 32], strides = [1, 1]} : vector<2x128xf32> to vector<2x32xf32>
    %172 = math.tanh %171 : vector<2x32xf32>
    %173 = vector.extract_strided_slice %170 {offsets = [0, 0], sizes = [2, 32], strides = [1, 1]} : vector<2x96xf32> to vector<2x32xf32>
    %174 = vector.extract_strided_slice %170 {offsets = [0, 32], sizes = [2, 32], strides = [1, 1]} : vector<2x96xf32> to vector<2x32xf32>
    %175 = vector.extract_strided_slice %170 {offsets = [0, 64], sizes = [2, 32], strides = [1, 1]} : vector<2x96xf32> to vector<2x32xf32>
    %176 = arith.mulf %174, %138 : vector<2x32xf32>
    %177 = arith.mulf %173, %172 : vector<2x32xf32>
    %178 = arith.addf %176, %177 : vector<2x32xf32>
    %179 = math.tanh %178 : vector<2x32xf32>
    %180 = arith.mulf %175, %179 : vector<2x32xf32>
    %181 = vector.extract_strided_slice %20 {offsets = [8, 0], sizes = [2, 128], strides = [1, 1]} : vector<16x128xf32> to vector<2x128xf32>
    %cst_40 = arith.constant dense<0.000000e+00> : vector<2x128xf32>
    %182 = tpu.matmul %159, %11, %cst_40 {dimension_numbers = #tpu.dot_dimension_numbers<[1], [0], [0], [1], [0, 0, 1, 1], [], []>} : vector<2x32xf32>, vector<32x128xf32>, vector<2x128xf32> -> vector<2x128xf32>
    %183 = arith.addf %181, %182 : vector<2x128xf32>
    %184 = vector.extract_strided_slice %183 {offsets = [0, 0], sizes = [2, 96], strides = [1, 1]} : vector<2x128xf32> to vector<2x96xf32>
    %185 = arith.negf %184 : vector<2x96xf32>
    %186 = math.exp %185 : vector<2x96xf32>
    %cst_41 = arith.constant 1.000000e+00 : f32
    %187 = vector.broadcast %cst_41 : f32 to vector<2x96xf32>
    %188 = arith.addf %187, %186 : vector<2x96xf32>
    %189 = arith.divf %187, %188 : vector<2x96xf32>
    %190 = vector.extract_strided_slice %183 {offsets = [0, 96], sizes = [2, 32], strides = [1, 1]} : vector<2x128xf32> to vector<2x32xf32>
    %191 = math.tanh %190 : vector<2x32xf32>
    %192 = vector.extract_strided_slice %189 {offsets = [0, 0], sizes = [2, 32], strides = [1, 1]} : vector<2x96xf32> to vector<2x32xf32>
    %193 = vector.extract_strided_slice %189 {offsets = [0, 32], sizes = [2, 32], strides = [1, 1]} : vector<2x96xf32> to vector<2x32xf32>
    %194 = vector.extract_strided_slice %189 {offsets = [0, 64], sizes = [2, 32], strides = [1, 1]} : vector<2x96xf32> to vector<2x32xf32>
    %195 = arith.mulf %193, %157 : vector<2x32xf32>
    %196 = arith.mulf %192, %191 : vector<2x32xf32>
    %197 = arith.addf %195, %196 : vector<2x32xf32>
    %198 = math.tanh %197 : vector<2x32xf32>
    %199 = arith.mulf %194, %198 : vector<2x32xf32>
    %cst_42 = arith.constant dense<0.000000e+00> : vector<2x128xf32>
    %200 = tpu.matmul %199, %12, %cst_42 {dimension_numbers = #tpu.dot_dimension_numbers<[1], [0], [0], [1], [0, 0, 1, 1], [], []>} : vector<2x32xf32>, vector<32x128xf32>, vector<2x128xf32> -> vector<2x128xf32>
    %cst_43 = arith.constant dense<0.000000e+00> : vector<2x128xf32>
    %201 = tpu.matmul %180, %13, %cst_43 {dimension_numbers = #tpu.dot_dimension_numbers<[1], [0], [0], [1], [0, 0, 1, 1], [], []>} : vector<2x32xf32>, vector<32x128xf32>, vector<2x128xf32> -> vector<2x128xf32>
    %202 = arith.addf %200, %201 : vector<2x128xf32>
    %203 = vector.broadcast %14 : vector<1x128xf32> to vector<2x128xf32>
    %204 = arith.addf %202, %203 : vector<2x128xf32>
    %205 = vector.extract_strided_slice %204 {offsets = [0, 0], sizes = [2, 96], strides = [1, 1]} : vector<2x128xf32> to vector<2x96xf32>
    %206 = arith.negf %205 : vector<2x96xf32>
    %207 = math.exp %206 : vector<2x96xf32>
    %cst_44 = arith.constant 1.000000e+00 : f32
    %208 = vector.broadcast %cst_44 : f32 to vector<2x96xf32>
    %209 = arith.addf %208, %207 : vector<2x96xf32>
    %210 = arith.divf %208, %209 : vector<2x96xf32>
    %211 = vector.extract_strided_slice %204 {offsets = [0, 96], sizes = [2, 32], strides = [1, 1]} : vector<2x128xf32> to vector<2x32xf32>
    %212 = math.tanh %211 : vector<2x32xf32>
    %213 = vector.extract_strided_slice %210 {offsets = [0, 0], sizes = [2, 32], strides = [1, 1]} : vector<2x96xf32> to vector<2x32xf32>
    %214 = vector.extract_strided_slice %210 {offsets = [0, 32], sizes = [2, 32], strides = [1, 1]} : vector<2x96xf32> to vector<2x32xf32>
    %215 = vector.extract_strided_slice %210 {offsets = [0, 64], sizes = [2, 32], strides = [1, 1]} : vector<2x96xf32> to vector<2x32xf32>
    %216 = arith.mulf %214, %178 : vector<2x32xf32>
    %217 = arith.mulf %213, %212 : vector<2x32xf32>
    %218 = arith.addf %216, %217 : vector<2x32xf32>
    %219 = math.tanh %218 : vector<2x32xf32>
    %220 = arith.mulf %215, %219 : vector<2x32xf32>
    %221 = vector.extract_strided_slice %20 {offsets = [10, 0], sizes = [2, 128], strides = [1, 1]} : vector<16x128xf32> to vector<2x128xf32>
    %cst_45 = arith.constant dense<0.000000e+00> : vector<2x128xf32>
    %222 = tpu.matmul %199, %11, %cst_45 {dimension_numbers = #tpu.dot_dimension_numbers<[1], [0], [0], [1], [0, 0, 1, 1], [], []>} : vector<2x32xf32>, vector<32x128xf32>, vector<2x128xf32> -> vector<2x128xf32>
    %223 = arith.addf %221, %222 : vector<2x128xf32>
    %224 = vector.extract_strided_slice %223 {offsets = [0, 0], sizes = [2, 96], strides = [1, 1]} : vector<2x128xf32> to vector<2x96xf32>
    %225 = arith.negf %224 : vector<2x96xf32>
    %226 = math.exp %225 : vector<2x96xf32>
    %cst_46 = arith.constant 1.000000e+00 : f32
    %227 = vector.broadcast %cst_46 : f32 to vector<2x96xf32>
    %228 = arith.addf %227, %226 : vector<2x96xf32>
    %229 = arith.divf %227, %228 : vector<2x96xf32>
    %230 = vector.extract_strided_slice %223 {offsets = [0, 96], sizes = [2, 32], strides = [1, 1]} : vector<2x128xf32> to vector<2x32xf32>
    %231 = math.tanh %230 : vector<2x32xf32>
    %232 = vector.extract_strided_slice %229 {offsets = [0, 0], sizes = [2, 32], strides = [1, 1]} : vector<2x96xf32> to vector<2x32xf32>
    %233 = vector.extract_strided_slice %229 {offsets = [0, 32], sizes = [2, 32], strides = [1, 1]} : vector<2x96xf32> to vector<2x32xf32>
    %234 = vector.extract_strided_slice %229 {offsets = [0, 64], sizes = [2, 32], strides = [1, 1]} : vector<2x96xf32> to vector<2x32xf32>
    %235 = arith.mulf %233, %197 : vector<2x32xf32>
    %236 = arith.mulf %232, %231 : vector<2x32xf32>
    %237 = arith.addf %235, %236 : vector<2x32xf32>
    %238 = math.tanh %237 : vector<2x32xf32>
    %239 = arith.mulf %234, %238 : vector<2x32xf32>
    %cst_47 = arith.constant dense<0.000000e+00> : vector<2x128xf32>
    %240 = tpu.matmul %239, %12, %cst_47 {dimension_numbers = #tpu.dot_dimension_numbers<[1], [0], [0], [1], [0, 0, 1, 1], [], []>} : vector<2x32xf32>, vector<32x128xf32>, vector<2x128xf32> -> vector<2x128xf32>
    %cst_48 = arith.constant dense<0.000000e+00> : vector<2x128xf32>
    %241 = tpu.matmul %220, %13, %cst_48 {dimension_numbers = #tpu.dot_dimension_numbers<[1], [0], [0], [1], [0, 0, 1, 1], [], []>} : vector<2x32xf32>, vector<32x128xf32>, vector<2x128xf32> -> vector<2x128xf32>
    %242 = arith.addf %240, %241 : vector<2x128xf32>
    %243 = vector.broadcast %14 : vector<1x128xf32> to vector<2x128xf32>
    %244 = arith.addf %242, %243 : vector<2x128xf32>
    %245 = vector.extract_strided_slice %244 {offsets = [0, 0], sizes = [2, 96], strides = [1, 1]} : vector<2x128xf32> to vector<2x96xf32>
    %246 = arith.negf %245 : vector<2x96xf32>
    %247 = math.exp %246 : vector<2x96xf32>
    %cst_49 = arith.constant 1.000000e+00 : f32
    %248 = vector.broadcast %cst_49 : f32 to vector<2x96xf32>
    %249 = arith.addf %248, %247 : vector<2x96xf32>
    %250 = arith.divf %248, %249 : vector<2x96xf32>
    %251 = vector.extract_strided_slice %244 {offsets = [0, 96], sizes = [2, 32], strides = [1, 1]} : vector<2x128xf32> to vector<2x32xf32>
    %252 = math.tanh %251 : vector<2x32xf32>
    %253 = vector.extract_strided_slice %250 {offsets = [0, 0], sizes = [2, 32], strides = [1, 1]} : vector<2x96xf32> to vector<2x32xf32>
    %254 = vector.extract_strided_slice %250 {offsets = [0, 32], sizes = [2, 32], strides = [1, 1]} : vector<2x96xf32> to vector<2x32xf32>
    %255 = vector.extract_strided_slice %250 {offsets = [0, 64], sizes = [2, 32], strides = [1, 1]} : vector<2x96xf32> to vector<2x32xf32>
    %256 = arith.mulf %254, %218 : vector<2x32xf32>
    %257 = arith.mulf %253, %252 : vector<2x32xf32>
    %258 = arith.addf %256, %257 : vector<2x32xf32>
    %259 = math.tanh %258 : vector<2x32xf32>
    %260 = arith.mulf %255, %259 : vector<2x32xf32>
    %261 = vector.extract_strided_slice %20 {offsets = [12, 0], sizes = [2, 128], strides = [1, 1]} : vector<16x128xf32> to vector<2x128xf32>
    %cst_50 = arith.constant dense<0.000000e+00> : vector<2x128xf32>
    %262 = tpu.matmul %239, %11, %cst_50 {dimension_numbers = #tpu.dot_dimension_numbers<[1], [0], [0], [1], [0, 0, 1, 1], [], []>} : vector<2x32xf32>, vector<32x128xf32>, vector<2x128xf32> -> vector<2x128xf32>
    %263 = arith.addf %261, %262 : vector<2x128xf32>
    %264 = vector.extract_strided_slice %263 {offsets = [0, 0], sizes = [2, 96], strides = [1, 1]} : vector<2x128xf32> to vector<2x96xf32>
    %265 = arith.negf %264 : vector<2x96xf32>
    %266 = math.exp %265 : vector<2x96xf32>
    %cst_51 = arith.constant 1.000000e+00 : f32
    %267 = vector.broadcast %cst_51 : f32 to vector<2x96xf32>
    %268 = arith.addf %267, %266 : vector<2x96xf32>
    %269 = arith.divf %267, %268 : vector<2x96xf32>
    %270 = vector.extract_strided_slice %263 {offsets = [0, 96], sizes = [2, 32], strides = [1, 1]} : vector<2x128xf32> to vector<2x32xf32>
    %271 = math.tanh %270 : vector<2x32xf32>
    %272 = vector.extract_strided_slice %269 {offsets = [0, 0], sizes = [2, 32], strides = [1, 1]} : vector<2x96xf32> to vector<2x32xf32>
    %273 = vector.extract_strided_slice %269 {offsets = [0, 32], sizes = [2, 32], strides = [1, 1]} : vector<2x96xf32> to vector<2x32xf32>
    %274 = vector.extract_strided_slice %269 {offsets = [0, 64], sizes = [2, 32], strides = [1, 1]} : vector<2x96xf32> to vector<2x32xf32>
    %275 = arith.mulf %273, %237 : vector<2x32xf32>
    %276 = arith.mulf %272, %271 : vector<2x32xf32>
    %277 = arith.addf %275, %276 : vector<2x32xf32>
    %278 = math.tanh %277 : vector<2x32xf32>
    %279 = arith.mulf %274, %278 : vector<2x32xf32>
    %cst_52 = arith.constant dense<0.000000e+00> : vector<2x128xf32>
    %280 = tpu.matmul %279, %12, %cst_52 {dimension_numbers = #tpu.dot_dimension_numbers<[1], [0], [0], [1], [0, 0, 1, 1], [], []>} : vector<2x32xf32>, vector<32x128xf32>, vector<2x128xf32> -> vector<2x128xf32>
    %cst_53 = arith.constant dense<0.000000e+00> : vector<2x128xf32>
    %281 = tpu.matmul %260, %13, %cst_53 {dimension_numbers = #tpu.dot_dimension_numbers<[1], [0], [0], [1], [0, 0, 1, 1], [], []>} : vector<2x32xf32>, vector<32x128xf32>, vector<2x128xf32> -> vector<2x128xf32>
    %282 = arith.addf %280, %281 : vector<2x128xf32>
    %283 = vector.broadcast %14 : vector<1x128xf32> to vector<2x128xf32>
    %284 = arith.addf %282, %283 : vector<2x128xf32>
    %285 = vector.extract_strided_slice %284 {offsets = [0, 0], sizes = [2, 96], strides = [1, 1]} : vector<2x128xf32> to vector<2x96xf32>
    %286 = arith.negf %285 : vector<2x96xf32>
    %287 = math.exp %286 : vector<2x96xf32>
    %cst_54 = arith.constant 1.000000e+00 : f32
    %288 = vector.broadcast %cst_54 : f32 to vector<2x96xf32>
    %289 = arith.addf %288, %287 : vector<2x96xf32>
    %290 = arith.divf %288, %289 : vector<2x96xf32>
    %291 = vector.extract_strided_slice %284 {offsets = [0, 96], sizes = [2, 32], strides = [1, 1]} : vector<2x128xf32> to vector<2x32xf32>
    %292 = math.tanh %291 : vector<2x32xf32>
    %293 = vector.extract_strided_slice %290 {offsets = [0, 0], sizes = [2, 32], strides = [1, 1]} : vector<2x96xf32> to vector<2x32xf32>
    %294 = vector.extract_strided_slice %290 {offsets = [0, 32], sizes = [2, 32], strides = [1, 1]} : vector<2x96xf32> to vector<2x32xf32>
    %295 = vector.extract_strided_slice %290 {offsets = [0, 64], sizes = [2, 32], strides = [1, 1]} : vector<2x96xf32> to vector<2x32xf32>
    %296 = arith.mulf %294, %258 : vector<2x32xf32>
    %297 = arith.mulf %293, %292 : vector<2x32xf32>
    %298 = arith.addf %296, %297 : vector<2x32xf32>
    %299 = math.tanh %298 : vector<2x32xf32>
    %300 = arith.mulf %295, %299 : vector<2x32xf32>
    %301 = vector.extract_strided_slice %20 {offsets = [14, 0], sizes = [2, 128], strides = [1, 1]} : vector<16x128xf32> to vector<2x128xf32>
    %cst_55 = arith.constant dense<0.000000e+00> : vector<2x128xf32>
    %302 = tpu.matmul %279, %11, %cst_55 {dimension_numbers = #tpu.dot_dimension_numbers<[1], [0], [0], [1], [0, 0, 1, 1], [], []>} : vector<2x32xf32>, vector<32x128xf32>, vector<2x128xf32> -> vector<2x128xf32>
    %303 = arith.addf %301, %302 : vector<2x128xf32>
    %304 = vector.extract_strided_slice %303 {offsets = [0, 0], sizes = [2, 96], strides = [1, 1]} : vector<2x128xf32> to vector<2x96xf32>
    %305 = arith.negf %304 : vector<2x96xf32>
    %306 = math.exp %305 : vector<2x96xf32>
    %cst_56 = arith.constant 1.000000e+00 : f32
    %307 = vector.broadcast %cst_56 : f32 to vector<2x96xf32>
    %308 = arith.addf %307, %306 : vector<2x96xf32>
    %309 = arith.divf %307, %308 : vector<2x96xf32>
    %310 = vector.extract_strided_slice %303 {offsets = [0, 96], sizes = [2, 32], strides = [1, 1]} : vector<2x128xf32> to vector<2x32xf32>
    %311 = math.tanh %310 : vector<2x32xf32>
    %312 = vector.extract_strided_slice %309 {offsets = [0, 0], sizes = [2, 32], strides = [1, 1]} : vector<2x96xf32> to vector<2x32xf32>
    %313 = vector.extract_strided_slice %309 {offsets = [0, 32], sizes = [2, 32], strides = [1, 1]} : vector<2x96xf32> to vector<2x32xf32>
    %314 = vector.extract_strided_slice %309 {offsets = [0, 64], sizes = [2, 32], strides = [1, 1]} : vector<2x96xf32> to vector<2x32xf32>
    %315 = arith.mulf %313, %277 : vector<2x32xf32>
    %316 = arith.mulf %312, %311 : vector<2x32xf32>
    %317 = arith.addf %315, %316 : vector<2x32xf32>
    %318 = math.tanh %317 : vector<2x32xf32>
    %319 = arith.mulf %314, %318 : vector<2x32xf32>
    %cst_57 = arith.constant dense<0.000000e+00> : vector<2x128xf32>
    %320 = tpu.matmul %319, %12, %cst_57 {dimension_numbers = #tpu.dot_dimension_numbers<[1], [0], [0], [1], [0, 0, 1, 1], [], []>} : vector<2x32xf32>, vector<32x128xf32>, vector<2x128xf32> -> vector<2x128xf32>
    %cst_58 = arith.constant dense<0.000000e+00> : vector<2x128xf32>
    %321 = tpu.matmul %300, %13, %cst_58 {dimension_numbers = #tpu.dot_dimension_numbers<[1], [0], [0], [1], [0, 0, 1, 1], [], []>} : vector<2x32xf32>, vector<32x128xf32>, vector<2x128xf32> -> vector<2x128xf32>
    %322 = arith.addf %320, %321 : vector<2x128xf32>
    %323 = vector.broadcast %14 : vector<1x128xf32> to vector<2x128xf32>
    %324 = arith.addf %322, %323 : vector<2x128xf32>
    %325 = vector.extract_strided_slice %324 {offsets = [0, 0], sizes = [2, 96], strides = [1, 1]} : vector<2x128xf32> to vector<2x96xf32>
    %326 = arith.negf %325 : vector<2x96xf32>
    %327 = math.exp %326 : vector<2x96xf32>
    %cst_59 = arith.constant 1.000000e+00 : f32
    %328 = vector.broadcast %cst_59 : f32 to vector<2x96xf32>
    %329 = arith.addf %328, %327 : vector<2x96xf32>
    %330 = arith.divf %328, %329 : vector<2x96xf32>
    %331 = vector.extract_strided_slice %324 {offsets = [0, 96], sizes = [2, 32], strides = [1, 1]} : vector<2x128xf32> to vector<2x32xf32>
    %332 = math.tanh %331 : vector<2x32xf32>
    %333 = vector.extract_strided_slice %330 {offsets = [0, 0], sizes = [2, 32], strides = [1, 1]} : vector<2x96xf32> to vector<2x32xf32>
    %334 = vector.extract_strided_slice %330 {offsets = [0, 32], sizes = [2, 32], strides = [1, 1]} : vector<2x96xf32> to vector<2x32xf32>
    %335 = vector.extract_strided_slice %330 {offsets = [0, 64], sizes = [2, 32], strides = [1, 1]} : vector<2x96xf32> to vector<2x32xf32>
    %336 = arith.mulf %334, %298 : vector<2x32xf32>
    %337 = arith.mulf %333, %332 : vector<2x32xf32>
    %338 = arith.addf %336, %337 : vector<2x32xf32>
    %339 = math.tanh %338 : vector<2x32xf32>
    %340 = arith.mulf %335, %339 : vector<2x32xf32>
    %c0_60 = arith.constant 0 : index
    %c0_61 = arith.constant 0 : index
    %c0_62 = arith.constant 0 : index
    %341 = vector.load %arg13[%c0_60, %c0_61, %c0_62] : memref<2x2x32xf32, #tpu.memory_space<vmem>>, vector<1x2x32xf32>
    %342 = vector.shape_cast %341 : vector<1x2x32xf32> to vector<2x32xf32>
    %343 = vector.shape_cast %319 : vector<2x32xf32> to vector<1x2x32xf32>
    tpu.vector_store %arg13[%c0_60, %c0_61, %c0_62], %343 {strides = array<i32>} : memref<2x2x32xf32, #tpu.memory_space<vmem>>, vector<1x2x32xf32>,
    %c0_63 = arith.constant 0 : index
    %c0_64 = arith.constant 0 : index
    %c0_65 = arith.constant 0 : index
    %344 = vector.load %arg14[%c0_63, %c0_64, %c0_65] : memref<2x2x32xf32, #tpu.memory_space<vmem>>, vector<1x2x32xf32>
    %345 = vector.shape_cast %344 : vector<1x2x32xf32> to vector<2x32xf32>
    %346 = vector.shape_cast %317 : vector<2x32xf32> to vector<1x2x32xf32>
    tpu.vector_store %arg14[%c0_63, %c0_64, %c0_65], %346 {strides = array<i32>} : memref<2x2x32xf32, #tpu.memory_space<vmem>>, vector<1x2x32xf32>,
    %c1 = arith.constant 1 : index
    %c0_66 = arith.constant 0 : index
    %c0_67 = arith.constant 0 : index
    %347 = vector.load %arg13[%c1, %c0_66, %c0_67] : memref<2x2x32xf32, #tpu.memory_space<vmem>>, vector<1x2x32xf32>
    %348 = vector.shape_cast %347 : vector<1x2x32xf32> to vector<2x32xf32>
    %349 = vector.shape_cast %340 : vector<2x32xf32> to vector<1x2x32xf32>
    tpu.vector_store %arg13[%c1, %c0_66, %c0_67], %349 {strides = array<i32>} : memref<2x2x32xf32, #tpu.memory_space<vmem>>, vector<1x2x32xf32>,
    %c1_68 = arith.constant 1 : index
    %c0_69 = arith.constant 0 : index
    %c0_70 = arith.constant 0 : index
    %350 = vector.load %arg14[%c1_68, %c0_69, %c0_70] : memref<2x2x32xf32, #tpu.memory_space<vmem>>, vector<1x2x32xf32>
    %351 = vector.shape_cast %350 : vector<1x2x32xf32> to vector<2x32xf32>
    %352 = vector.shape_cast %338 : vector<2x32xf32> to vector<1x2x32xf32>
    tpu.vector_store %arg14[%c1_68, %c0_69, %c0_70], %352 {strides = array<i32>} : memref<2x2x32xf32, #tpu.memory_space<vmem>>, vector<1x2x32xf32>,
    %353 = tpu.concatenate %60, %100, %140, %180, %220, %260, %300, %340 in 0 : vector<2x32xf32>, vector<2x32xf32>, vector<2x32xf32>, vector<2x32xf32>, vector<2x32xf32>, vector<2x32xf32>, vector<2x32xf32>, vector<2x32xf32> -> vector<16x32xf32>
    %c0_71 = arith.constant 0 : index
    %c0_72 = arith.constant 0 : index
    %354 = vector.load %arg10[%c0_71, %c0_72] : memref<32x128xf32, #tpu.memory_space<vmem>>, vector<32x128xf32>
    %cst_73 = arith.constant dense<0.000000e+00> : vector<16x128xf32>
    %355 = tpu.matmul %353, %354, %cst_73 {dimension_numbers = #tpu.dot_dimension_numbers<[1], [0], [0], [1], [0, 0, 1, 1], [], []>} : vector<16x32xf32>, vector<32x128xf32>, vector<16x128xf32> -> vector<16x128xf32>
    %c0_74 = arith.constant 0 : index
    %c0_75 = arith.constant 0 : index
    %356 = vector.load %arg11[%c0_74, %c0_75] : memref<1x128xf32, #tpu.memory_space<vmem>>, vector<1x128xf32>
    %357 = vector.broadcast %356 : vector<1x128xf32> to vector<16x128xf32>
    %358 = arith.addf %355, %357 : vector<16x128xf32>
    %c0_76 = arith.constant 0 : index
    %c0_77 = arith.constant 0 : index
    %359 = vector.load %arg12[%c0_76, %c0_77] : memref<16x128xf32, #tpu.memory_space<vmem>>, vector<16x128xf32>
    tpu.vector_store %arg12[%c0_76, %c0_77], %358 {strides = array<i32>} : memref<16x128xf32, #tpu.memory_space<vmem>>, vector<16x128xf32>,
    return
  }
}

</mosaic_0001>

<bundles_post_ra>
// kernel: tpu_custom_call.1
= control target key start
LH: loop header
LB: loop body
LE: loop exit
PB: predicated region body
PF: predicated region fallthrough
CT: control target
= control target key end

     0   :  { %20 = vsyncpa [#allocation3], 0  ;;  %s2610_s0 = inlined_call_operand.hbm [shape: f32[2,16], index: 0, kind: input, shape index: {}]   ;;  %s2611_s1 = inlined_call_operand.hbm [shape: f32[16,128], index: 1, kind: input, shape index: {}]   ;;  %s2612_s2 = inlined_call_operand.vmem [shape: f32[1,128], index: 2, kind: input, shape index: {}]   ;;  %s2613_s3 = inlined_call_operand.hbm [shape: f32[16,21], index: 3, kind: input, shape index: {}]   ;;  %s2614_s4 = inlined_call_operand.hbm [shape: f32[21,128], index: 4, kind: input, shape index: {}]   ;;  %s2615_s5 = inlined_call_operand.vmem [shape: f32[1,128], index: 5, kind: input, shape index: {}]   ;;  %s2616_s6 = inlined_call_operand.hbm [shape: f32[32,128], index: 6, kind: input, shape index: {}]   ;;  %s2617_s7 = inlined_call_operand.hbm [shape: f32[32,128], index: 7, kind: input, shape index: {}]   ;;  %s2618_s8 = inlined_call_operand.hbm [shape: f32[32,128], index: 8, kind: input, shape index: {}]   ;;  %s2619_s9 = inlined_call_operand.vmem [shape: f32[1,128], index: 9, kind: input, shape index: {}]   ;;  %s2620_s10 = inlined_call_operand.hbm [shape: f32[32,128], index: 10, kind: input, shape index: {}]   ;;  %s2621_s11 = inlined_call_operand.vmem [shape: f32[1,128], index: 11, kind: input, shape index: {}]   ;;  %s2622_s12 = inlined_call_operand.hbm [shape: f32[16,128], index: 12, kind: output, shape index: {0}]   ;;  %s2623_s13 = inlined_call_operand.hbm [shape: f32[2,2,32], index: 13, kind: output, shape index: {1}]   ;;  %s2624_s14 = inlined_call_operand.hbm [shape: f32[2,2,32], index: 14, kind: output, shape index: {2}]  }
   0x1   :  { %21 = vsyncpa [#allocation6], 0 }
   0x2   :  { %22 = vsyncpa [#allocation9], 0 }
   0x3   :  { %23 = vsyncpa [#allocation12], 0 }
   0x4   :  { %24 = vsyncpa [#allocation15], 0 }
   0x5   :  { %25 = vsyncpa [#allocation4], 0  ;;  %s42_s15 = sshll.u32 %s2611_s1, 4  ;;  %s43_s15 = int_to_ptr.hbm [resolvable:$true] %s42_s15 }
   0x6   :  { %26 = vsyncpa [#allocation18], 0  ;;  %s2101_s16 = smov [#allocation5]   ;;  %s70_s20 = sshll.u32 %s2614_s4, 4  ;;  %s71_s20 = int_to_ptr.hbm [resolvable:$true] %s70_s20 }
   0x7   :  { %s44_s17 = sshll.u32 %s2101_s16, 4  ;;  %s2102_s21 = smov 128   ;;  %s45_s17 = int_to_ptr.vmem [resolvable:$true] %s44_s17 }
   0x8   :  { %s2103_s22 = smov 8   ;;  %s2104_s23 = smov [#allocation8]  }
   0x9   :  { %50 = dma.hbm_to_vmem [thread:$0]  %s43_s15, 256, %s45_s17, [#allocation6], %s2102_s21, %s2102_s21, %s2103_s22  }
   0xa   :  { %s72_s24 = sshll.u32 %s2104_s23, 4  ;;  %s98_s26 = sshll.u32 %s2617_s7, 4  ;;  %s73_s24 = int_to_ptr.vmem [resolvable:$true] %s72_s24  ;;  %s99_s26 = int_to_ptr.hbm [resolvable:$true] %s98_s26 }
   0xb   :  { %78 = dma.hbm_to_vmem [thread:$0]  %s71_s20, 384, %s73_s24, [#allocation9], %s2102_s21, %s2102_s21, %s2103_s22  }
   0xc   :  { %s32_s28 = sshll.u32 %s2610_s0, 4  ;;  %s2105_s29 = smov [#allocation11]   ;;  %s33_s28 = int_to_ptr.hbm [resolvable:$true] %s32_s28 }
   0xd   :  { %s100_s30 = sshll.u32 %s2105_s29, 4  ;;  %s2106_s15 = smov [#allocation2]   ;;  %s101_s30 = int_to_ptr.vmem [resolvable:$true] %s100_s30 }
   0xe   :  { %106 = dma.hbm_to_vmem [thread:$0]  %s99_s26, 512, %s101_s30, [#allocation12], %s2102_s21, %s2102_s21, %s2103_s22  }
   0xf   :  { %s34_s7 = sshll.u32 %s2106_s15, 4  ;;  %s57_s18 = sshll.u32 %s2613_s3, 4  ;;  %s35_s7 = int_to_ptr.vmem [resolvable:$true] %s34_s7  ;;  %s58_s18 = int_to_ptr.hbm [resolvable:$true] %s57_s18 }
  0x10   :  { %37 = dma.hbm_to_vmem [thread:$0]  %s33_s28, 32, %s35_s7, [#allocation3]  }
  0x11   :  { %s85_s0 = sshll.u32 %s2616_s6, 4  ;;  %s2107_s23 = smov [#allocation7]   ;;  %s86_s0 = int_to_ptr.hbm [resolvable:$true] %s85_s0 }
  0x12   :  { %s59_s24 = sshll.u32 %s2107_s23, 4  ;;  %s2108_s25 = smov [#allocation10]   ;;  %s60_s24 = int_to_ptr.vmem [resolvable:$true] %s59_s24 }
  0x13   :  { %65 = dma.hbm_to_vmem [thread:$0]  %s58_s18, 256, %s60_s24, [#allocation6], %s2102_s21, %s2102_s21, %s2103_s22  }
  0x14   :  { %s87_s1 = sshll.u32 %s2108_s25, 4  ;;  %s111_s3 = sshll.u32 %s2618_s8, 4  ;;  %s88_s1 = int_to_ptr.vmem [resolvable:$true] %s87_s1  ;;  %s112_s3 = int_to_ptr.hbm [resolvable:$true] %s111_s3 }
  0x15   :  { %93 = dma.hbm_to_vmem [thread:$0]  %s86_s0, 512, %s88_s1, [#allocation9], %s2102_s21, %s2102_s21, %s2103_s22  }
  0x16   :  { %s126_s28 = sshll.u32 %s2620_s10, 4  ;;  %s2109_s29 = smov [#allocation13]   ;;  %s127_s28 = int_to_ptr.hbm [resolvable:$true] %s126_s28 }
  0x17   :  { %s113_s30 = sshll.u32 %s2109_s29, 4  ;;  %s2110_s15 = smov [#allocation14]   ;;  %s114_s30 = int_to_ptr.vmem [resolvable:$true] %s113_s30 }
  0x18   :  { %119 = dma.hbm_to_vmem [thread:$0]  %s112_s3, 512, %s114_s30, [#allocation12], %s2102_s21, %s2102_s21, %s2103_s22  }
  0x19   :  { %s128_s8 = sshll.u32 %s2110_s15, 4  ;;  %s129_s8 = int_to_ptr.vmem [resolvable:$true] %s128_s8 }
  0x1a   :  { %134 = dma.hbm_to_vmem [thread:$0]  %s127_s28, 512, %s129_s8, [#allocation15], %s2102_s21, %s2102_s21, %s2103_s22  }
  0x1b   :  { %2087 = dma.done.wait [#allocation3], 32  }
  0x1c   :  { %2088 = vsyncadd [#allocation3], 4294967264 }
  0x1d   :  { %2089 = dma.done.wait [#allocation6], 512  }
  0x1e   :  { %2090 = vsyncadd [#allocation6], 4294966784 }
  0x1f   :  { %2091 = dma.done.wait [#allocation9], 896  }
  0x20   :  { %2092 = vsyncadd [#allocation9], 4294966400 }
  0x21   :  { %2093 = dma.done.wait [#allocation12], 1024  }
  0x22   :  { %2094 = vsyncadd [#allocation12], 4294966272 }
  0x23   :  { %2095 = dma.done.wait [#allocation15], 512  }
  0x24   :  { %2096 = vsyncadd [#allocation15], 4294966784  ;;  %v171_v0 = vld [vmem:[#allocation5 + $0x8] sm:$0xff]  ;;  %v170_v1 = vld [vmem:[#allocation5] sm:$0xff]  ;;  %vm176_vm0 = vcmask 130048   ;;  %vm230_vm1 = vcmask 1044480  }
  0x25   :  { %194 = vmatpush.msra.mxu0 %v171_v0  ;;  %v169_v2 = vld [vmem:[#allocation2] sm:$0x3]  ;;  %v2238_v3 = vld [vmem:[#allocation10 + $0x18] sm:$0xff]  ;;  %v2241_v4 = vld [vmem:[#allocation10 + $0x10] sm:$0xff]  ;;  %vm223_vm2 = vcmask 171008   ;;  %vm257_vm3 = vcmask 261120  }
  0x26   :  { %273 = vmatpush.msra.mxu2 %v2238_v3  ;;  %v218_v5 = vld [vmem:[#allocation8 + $0x10] sm:$0x1f]  ;;  %v2243_v6 = vld [vmem:[#allocation10 + $0x8] sm:$0xff]  ;;  %v2246_v7 = vld [vmem:[#allocation10] sm:$0xff]  ;;  %s2112_s18 = smov 96   ;;  %s1586_s4 = sshll.u32 %s2623_s13, 4  ;;  %s1587_s4 = int_to_ptr.hbm [resolvable:$true] %s1586_s4 }
  0x27   :  { %195 = vmatpush.msra.mxu0 %v170_v1  ;;  %1626 = vmatpush.msk.msra.mxu1 %vm230_vm1, %v218_v5  ;;  %v217_v8 = vld [vmem:[#allocation8 + $0x8] sm:$0xff]  ;;  %v216_v9 = vld [vmem:[#allocation8] sm:$0xff]  ;;  %v214_v10 = vld [vmem:[#allocation7] sm:$0xff]  ;;  %s2115_s3 = smov 2   ;;  %s1599_s28 = sshll.u32 %s2624_s14, 4  ;;  %s1600_s28 = int_to_ptr.hbm [resolvable:$true] %s1599_s28 }
  0x28   :  { %1625 = vmatmul.msk.f32.vlgmr.msra.gmra.mxu0 %vm176_vm0, %v169_v2  ;;  %274 = vmatpush.msra.mxu2 %v2241_v4  ;;  %v1688_v11 = vld [vmem:[%s2612_s2] ss:$0 sm:$0xff]  ;;  %s2111_s2 = smov 32   ;;  %v2278_v24 = vld [vmem:[#allocation13 + $0x18] sm:$0xff]  ;;  %v2282_v25 = vld [vmem:[#allocation13 + $0x10] sm:$0xff]  ;;  %s2116_s29 = smov [#allocation19]  }
  0x29   :  { %248 = vmatpush.msra.mxu1 %v217_v8  ;;  %v2269_v15 = vld [vmem:[%s2615_s5] ss:$0 sm:$0xff]  ;;  %336 = vmatpush.msrb.mxu0 %v2278_v24  ;;  %v2284_v26 = vld [vmem:[#allocation13 + $0x8] sm:$0xff]  ;;  %v2308_v45 = vld [vmem:[#allocation11 + $0x18] sm:$0xff]  ;;  %s2113_s5 = smov 64   ;;  %s1597_s30 = sshll.u32 %s2116_s29, 4  ;;  %s1598_s30 = int_to_ptr.vmem [resolvable:$true] %s1597_s30 }
  0x2a   :  { %275 = vmatpush.msra.mxu2 %v2243_v6  ;;  %494 = vmatpush.msra.mxu3 %v2278_v24  ;;  %v2290_v27 = vld [vmem:[#allocation13] sm:$0xff]  ;;  %v2310_v46 = vld [vmem:[#allocation11 + $0x10] sm:$0xff]  ;;  %v2314_v47 = vld [vmem:[#allocation11 + $0x8] sm:$0xff]  ;;  %s2117_s13 = smov [#allocation16]   ;;  %s1573_s7 = sshll.u32 %s2622_s12, 4  ;;  %s1574_s7 = int_to_ptr.hbm [resolvable:$true] %s1573_s7 }
  0x2b   :  { %249 = vmatpush.msra.mxu1 %v216_v9  ;;  %337 = vmatpush.msrb.mxu0 %v2282_v25  ;;  %v2318_v48 = vld [vmem:[#allocation11] sm:$0xff]  ;;  %s1571_s15 = sshll.u32 %s2117_s13, 4  ;;  %s1572_s15 = int_to_ptr.vmem [resolvable:$true] %s1571_s15 }
  0x2c   :  { %276 = vmatpush.msra.mxu2 %v2246_v7  ;;  %1627 = vmatmul.msk.f32.vlgmr.msra.gmra.mxu1 %vm223_vm2, %v214_v10  ;;  %v2342_v53 = vld [vmem:[%s2619_s9] ss:$0 sm:$0xff] }
  0x2d   :  { %578 = vmatpush.msrb.mxu1 %v2238_v3  ;;  %495 = vmatpush.msra.mxu3 %v2282_v25 }
  0x2e   :  { %425 = vmatpush.msrb.mxu2 %v2238_v3  ;;  %338 = vmatpush.msrb.mxu0 %v2284_v26 }
  0x2f   :  { %579 = vmatpush.msrb.mxu1 %v2241_v4  ;;  %496 = vmatpush.msra.mxu3 %v2284_v26 }
  0x30   :  { %426 = vmatpush.msrb.mxu2 %v2241_v4  ;;  %339 = vmatpush.msrb.mxu0 %v2290_v27 }
  0x31   :  { %580 = vmatpush.msrb.mxu1 %v2243_v6  ;;  %497 = vmatpush.msra.mxu3 %v2290_v27 }
  0x32   :  { %427 = vmatpush.msrb.mxu2 %v2243_v6  ;;  %361 = vmatpush.msra.mxu0 %v2308_v45 }
  0x33   :  { %581 = vmatpush.msrb.mxu1 %v2246_v7  ;;  %673 = vmatpush.msrb.mxu3 %v2308_v45 }
  0x34   :  { %428 = vmatpush.msrb.mxu2 %v2246_v7  ;;  %362 = vmatpush.msra.mxu0 %v2310_v46 }
  0x35   :  { %800 = vmatpush.msra.mxu1 %v2278_v24  ;;  %674 = vmatpush.msrb.mxu3 %v2310_v46 }
  0x36   :  { %363 = vmatpush.msra.mxu0 %v2314_v47 }
  0x37   :  { %801 = vmatpush.msra.mxu1 %v2282_v25  ;;  %675 = vmatpush.msrb.mxu3 %v2314_v47 }
  0x38   :  { %364 = vmatpush.msra.mxu0 %v2318_v48 }
  0x39   :  { %802 = vmatpush.msra.mxu1 %v2284_v26  ;;  %676 = vmatpush.msrb.mxu3 %v2318_v48 }
  0x3b   :  { %803 = vmatpush.msra.mxu1 %v2290_v27 }
  0xa5   :  { %v197_v12 = vpop.f32.mrf.mxu0 }
  0xa6   :  { %v198_v13 = vadd.f32 %v1688_v11, %v197_v12 }
  0xa8   :  { %1692 = vtanh.f32 %v198_v13 }
  0xa9   :  { %v251_v16 = vpop.f32.mrf.mxu1 }
  0xaa   :  { %v2272_v17 = vadd.f32 %v2269_v15, %v251_v16 }
  0xae   :  { %v2262_v14 = vpop.eup %1692 }
  0xaf   :  { %1629 = vmatmul.msk.f32.vlgmr.msra.gmra.mxu2 %vm257_vm3, %v2262_v14 }
  0xb0   :  { %647 = vmatpush.msra.mxu2 %v2278_v24 }
  0xb2   :  { %648 = vmatpush.msra.mxu2 %v2282_v25 }
  0xb4   :  { %649 = vmatpush.msra.mxu2 %v2284_v26 }
  0xb6   :  { %650 = vmatpush.msra.mxu2 %v2290_v27 }
 0x132   :  { %v278_v18 = vpop.f32.mrf.mxu2 }
 0x133   :  { %v281_v19 = vadd.f32 %v278_v18, %v2272_v17 }
 0x135   :  { %1694 = vtanh.f32 %v281_v19  ;;  %v1630_v21 = vmul.f32 -1.442695, %v281_v19 }
 0x137   :  { %1696 = vpow2.f32 %v1630_v21 }
 0x13b   :  { %v1695_v20 = vpop.eup %1694 }
 0x13c   :  { %307 = vrot.lane.b32.xlu0 %v1695_v20, %s2111_s2 }
 0x13d   :  { %v1697_v22 = vpop.eup %1696 }
 0x13e   :  { %v285_v23 = vadd.f32 1.0, %v1697_v22 }
 0x140   :  { %1698 = vrcp.f32 %v285_v23  ;;  %v297_v33 = vand.u32 2147483648, %v285_v23  ;;  %vm291_vm5 = vweird.f32 %v285_v23  ;;  %v295_v34 = vand.u32 2147483647, %v285_v23 }
 0x142   :  { %v298_v36 = vor.u32 1.1754944e-38, %v297_v33  ;;  %vm296_vm7 = vcmp.eq.f32.partialorder %v295_v34, 8.507059e+37 }
 0x144   :  { %302 = vrot.lane.b32.xlu0 %v2262_v14, %s2112_s18 }
 0x146   :  { %v1699_v28 = vpop.eup %1698 }
 0x147   :  { %v287_v29 = vmul.f32 %v1699_v28, %v285_v23  ;;  %vm292_vm4 = vweird.f32 %v1699_v28 }
 0x148   :  { %vm293_vm6 = vmor %vm291_vm5, %vm292_vm4 }
 0x149   :  { %v288_v30 = vsub.f32 1.0, %v287_v29 }
 0x14b   :  { %v289_v31 = vmul.f32 %v1699_v28, %v288_v30 }
 0x14d   :  { %v290_v32 = vadd.f32 %v1699_v28, %v289_v31 }
 0x14f   :  { %v294_v35 = vsel %vm293_vm6, %v1699_v28, %v290_v32 }
 0x150   :  { %v299_v38 = vsel %vm296_vm7, %v298_v36, %v294_v35 }
 0x1ae   :  { %v308_v37 = vpop.permute.xlu0 %307 }
 0x1af   :  { %v310_v39 = vmul.f32 %v308_v37, %v299_v38 }
 0x1b1   :  { %312 = vrot.lane.b32.xlu1 %v310_v39, %s2111_s2 }
 0x1b6   :  { %v303_v40 = vpop.permute.xlu0 %302 }
 0x1b7   :  { %1631 = vmatmul.msk.f32.vlgmr.msrb.gmra.mxu0 %vm257_vm3, %v303_v40  ;;  %v305_v41 = vmul.f32 %v303_v40, %v299_v38 }
 0x1b8   :  { %520 = vmatpush.msrb.mxu0 %v2308_v45 }
 0x1ba   :  { %521 = vmatpush.msrb.mxu0 %v2310_v46 }
 0x1bc   :  { %522 = vmatpush.msrb.mxu0 %v2314_v47 }
 0x1be   :  { %523 = vmatpush.msrb.mxu0 %v2318_v48 }
 0x223   :  { %v313_v42 = vpop.permute.xlu1 %312 }
 0x224   :  { %v2304_v43 = vadd.f32 %v313_v42, %v305_v41 }
 0x226   :  { %1700 = vtanh.f32 %v2304_v43 }
 0x22c   :  { %v1701_v44 = vpop.eup %1700 }
 0x22d   :  { %318 = vrot.lane.b32.xlu1 %v1701_v44, %s2111_s2 }
 0x234   :  { %v341_v52 = vpop.f32.mrf.mxu0 }
 0x29f   :  { %v319_v49 = vpop.permute.xlu1 %318 }
 0x2a0   :  { %v321_v50 = vmul.f32 %v319_v49, %v299_v38  ;;  %v458_v38 = vrot.slane %v2304_v43, 6 }
 0x2a2   :  { %345 = vrot.lane.b32.xlu2 %v321_v50, %s2113_s5 }
 0x2fc   :  { %v346_v51 = vpop.permute.xlu2 %345 }
 0x2fd   :  { %1632 = vmatmul.msk.f32.vlgmr.msra.gmra.mxu0 %vm257_vm3, %v346_v51  ;;  %1634 = vmatmul.msk.f32.vlgmr.msrb.gmra.mxu2 %vm257_vm3, %v346_v51 }
 0x2fe   :  { %731 = vmatpush.msra.mxu0 %v2238_v3  ;;  %826 = vmatpush.msrb.mxu2 %v2308_v45 }
 0x300   :  { %732 = vmatpush.msra.mxu0 %v2241_v4  ;;  %827 = vmatpush.msrb.mxu2 %v2310_v46 }
 0x302   :  { %733 = vmatpush.msra.mxu0 %v2243_v6  ;;  %828 = vmatpush.msrb.mxu2 %v2314_v47 }
 0x304   :  { %734 = vmatpush.msra.mxu0 %v2246_v7  ;;  %829 = vmatpush.msrb.mxu2 %v2318_v48 }
 0x37a   :  { %v366_v54 = vpop.f32.mrf.mxu0 }
 0x37b   :  { %v367_v55 = vadd.f32 %v366_v54, %v341_v52 }
 0x37d   :  { %v372_v56 = vadd.f32 %v2342_v53, %v367_v55 }
 0x37f   :  { %1702 = vtanh.f32 %v372_v56  ;;  %v1633_v1 = vmul.f32 -1.442695, %v372_v56 }
 0x380   :  { %v430_v57 = vpop.f32.mrf.mxu2 }
 0x381   :  { %v434_v58 = vrot.slane %v430_v57, 6 }
 0x383   :  { %v436_v59 = vadd.f32 %v434_v58, %v2272_v17  ;;  %v215_v58 = vld [vmem:[#allocation7 + $0x8] sm:$0xff] }
 0x384   :  { %1628 = vmatmul.msk.f32.gmra.mxu1 %vm223_vm2, %v215_v58 }
 0x385   :  { %v1703_v60 = vpop.eup %1702  ;;  %1704 = vtanh.f32 %v436_v59  ;;  %v1635_v62 = vmul.f32 -1.442695, %v436_v59 }
 0x386   :  { %398 = vrot.lane.b32.xlu0 %v1703_v60, %s2111_s2 }
 0x387   :  { %1706 = vpow2.f32 %v1635_v62 }
 0x38b   :  { %v1705_v61 = vpop.eup %1704 }
 0x38c   :  { %462 = vrot.lane.b32.xlu2 %v1705_v61, %s2111_s2 }
 0x38d   :  { %v1707_v63 = vpop.eup %1706 }
 0x38e   :  { %v440_v0 = vadd.f32 1.0, %v1707_v63 }
 0x390   :  { %1708 = vrcp.f32 %v440_v0  ;;  %v452_v13 = vand.u32 2147483648, %v440_v0  ;;  %vm446_vm9 = vweird.f32 %v440_v0  ;;  %v450_v16 = vand.u32 2147483647, %v440_v0 }
 0x391   :  { %1710 = vpow2.f32 %v1633_v1 }
 0x392   :  { %v453_v19 = vor.u32 1.1754944e-38, %v452_v13  ;;  %vm451_vm11 = vcmp.eq.f32.partialorder %v450_v16, 8.507059e+37 }
 0x394   :  { %393 = vrot.lane.b32.xlu2 %v2262_v14, %s2113_s5 }
 0x396   :  { %v1709_v2 = vpop.eup %1708 }
 0x397   :  { %v442_v5 = vmul.f32 %v1709_v2, %v440_v0  ;;  %v1711_v8 = vpop.eup %1710  ;;  %vm447_vm8 = vweird.f32 %v1709_v2 }
 0x398   :  { %v376_v10 = vadd.f32 1.0, %v1711_v8  ;;  %vm448_vm10 = vmor %vm446_vm9, %vm447_vm8 }
 0x399   :  { %v443_v9 = vsub.f32 1.0, %v442_v5 }
 0x39a   :  { %1712 = vrcp.f32 %v376_v10  ;;  %v388_v31 = vand.u32 2147483648, %v376_v10  ;;  %vm382_vm13 = vweird.f32 %v376_v10  ;;  %v386_v32 = vand.u32 2147483647, %v376_v10 }
 0x39b   :  { %v444_v11 = vmul.f32 %v1709_v2, %v443_v9 }
 0x39c   :  { %v389_v34 = vor.u32 1.1754944e-38, %v388_v31  ;;  %vm387_vm15 = vcmp.eq.f32.partialorder %v386_v32, 8.507059e+37 }
 0x39d   :  { %v445_v12 = vadd.f32 %v1709_v2, %v444_v11 }
 0x39f   :  { %v449_v18 = vsel %vm448_vm10, %v1709_v2, %v445_v12 }
 0x3a0   :  { %v1713_v14 = vpop.eup %1712  ;;  %v454_v22 = vsel %vm451_vm11, %v453_v19, %v449_v18 }
 0x3a1   :  { %v378_v20 = vmul.f32 %v1713_v14, %v376_v10  ;;  %vm383_vm12 = vweird.f32 %v1713_v14  ;;  %v460_v39 = vmul.f32 %v458_v38, %v454_v22 }
 0x3a2   :  { %vm384_vm14 = vmor %vm382_vm13, %vm383_vm12 }
 0x3a3   :  { %v379_v28 = vsub.f32 1.0, %v378_v20 }
 0x3a5   :  { %v380_v29 = vmul.f32 %v1713_v14, %v379_v28 }
 0x3a7   :  { %v381_v30 = vadd.f32 %v1713_v14, %v380_v29 }
 0x3a9   :  { %v385_v33 = vsel %vm384_vm14, %v1713_v14, %v381_v30 }
 0x3aa   :  { %v390_v35 = vsel %vm387_vm15, %v389_v34, %v385_v33 }
 0x3e6   :  { %v463_v21 = vpop.permute.xlu2 %462 }
 0x3e7   :  { %v465_v23 = vmul.f32 %v463_v21, %v454_v22 }
 0x3e9   :  { %467 = vrot.lane.b32.xlu1 %v465_v23, %s2111_s2 }
 0x3ee   :  { %v394_v44 = vpop.permute.xlu2 %393 }
 0x3ef   :  { %v396_v49 = vmul.f32 %v394_v44, %v390_v35 }
 0x3f8   :  { %v399_v36 = vpop.permute.xlu0 %398 }
 0x3f9   :  { %v401_v37 = vmul.f32 %v399_v36, %v390_v35 }
 0x3fb   :  { %403 = vrot.lane.b32.xlu0 %v401_v37, %s2111_s2 }
 0x401   :  { %v2382_v61 = vpop.f32.mrf.mxu1 }
 0x45b   :  { %v468_v40 = vpop.permute.xlu1 %467 }
 0x45c   :  { %v2353_v41 = vadd.f32 %v468_v40, %v460_v39 }
 0x45e   :  { %1714 = vtanh.f32 %v2353_v41 }
 0x464   :  { %v1715_v42 = vpop.eup %1714 }
 0x465   :  { %473 = vrot.lane.b32.xlu1 %v1715_v42, %s2111_s2 }
 0x46d   :  { %v404_v50 = vpop.permute.xlu0 %403 }
 0x46e   :  { %v2357_v51 = vadd.f32 %v404_v50, %v396_v49 }
 0x470   :  { %1716 = vtanh.f32 %v2357_v51 }
 0x476   :  { %v1717_v52 = vpop.eup %1716 }
 0x477   :  { %409 = vrot.lane.b32.xlu2 %v1717_v52, %s2111_s2 }
 0x4d1   :  { %v410_v43 = vpop.permute.xlu2 %409 }
 0x4d2   :  { %v2361_v54 = vmul.f32 %v410_v43, %v390_v35 }
 0x4d4   :  { %478 = vrot.lane.b32.xlu1 %v2361_v54, %s2113_s5 }
 0x4d7   :  { %v474_v55 = vpop.permute.xlu1 %473 }
 0x4d8   :  { %v476_v56 = vmul.f32 %v474_v55, %v454_v22  ;;  %v611_v55 = vrot.slane %v2353_v41, 6 }
 0x4da   :  { %v503_v57 = vrot.slane %v476_v56, 2 }
 0x4dc   :  { %504 = vrot.lane.b32.xlu0 %v503_v57, %s2113_s5 }
 0x546   :  { %v479_v59 = vpop.permute.xlu1 %478 }
 0x547   :  { %1636 = vmatmul.msk.f32.vlgmr.msra.gmra.mxu3 %vm257_vm3, %v479_v59 }
 0x548   :  { %884 = vmatpush.msra.mxu3 %v2238_v3 }
 0x54a   :  { %885 = vmatpush.msra.mxu3 %v2241_v4 }
 0x54c   :  { %886 = vmatpush.msra.mxu3 %v2243_v6 }
 0x54e   :  { %v505_v60 = vpop.permute.xlu0 %504  ;;  %887 = vmatpush.msra.mxu3 %v2246_v7 }
 0x54f   :  { %1637 = vmatmul.msk.f32.vlgmr.msrb.gmra.mxu0 %vm257_vm3, %v505_v60  ;;  %1639 = vmatmul.msk.f32.vlgmr.msrb.gmra.mxu1 %vm257_vm3, %v505_v60 }
 0x550   :  { %975 = vmatpush.msrb.mxu1 %v2308_v45  ;;  %950 = vmatpush.msrb.mxu0 %v2278_v24 }
 0x552   :  { %976 = vmatpush.msrb.mxu1 %v2310_v46  ;;  %951 = vmatpush.msrb.mxu0 %v2282_v25 }
 0x554   :  { %977 = vmatpush.msrb.mxu1 %v2314_v47  ;;  %952 = vmatpush.msrb.mxu0 %v2284_v26 }
 0x556   :  { %978 = vmatpush.msrb.mxu1 %v2318_v48  ;;  %953 = vmatpush.msrb.mxu0 %v2290_v27 }
 0x5ca   :  { %v499_v62 = vpop.f32.mrf.mxu3 }
 0x5cc   :  { %v525_v63 = vpop.f32.mrf.mxu0  ;;  %v583_v0 = vpop.f32.mrf.mxu1 }
 0x5cd   :  { %v526_v1 = vadd.f32 %v525_v63, %v499_v62  ;;  %v587_v2 = vrot.slane %v583_v0, 4 }
 0x5cf   :  { %v528_v5 = vadd.f32 %v2342_v53, %v526_v1  ;;  %v589_v8 = vadd.f32 %v587_v2, %v2272_v17 }
 0x5d1   :  { %1718 = vtanh.f32 %v528_v5  ;;  %v1640_v11 = vmul.f32 -1.442695, %v589_v8  ;;  %v1638_v14 = vmul.f32 -1.442695, %v528_v5 }
 0x5d2   :  { %1720 = vtanh.f32 %v589_v8 }
 0x5d3   :  { %1722 = vpow2.f32 %v1640_v11 }
 0x5d7   :  { %v1719_v9 = vpop.eup %1718 }
 0x5d8   :  { %v1721_v10 = vpop.eup %1720  ;;  %551 = vrot.lane.b32.xlu0 %v1719_v9, %s2111_s2 }
 0x5d9   :  { %615 = vrot.lane.b32.xlu2 %v1721_v10, %s2111_s2  ;;  %v1723_v12 = vpop.eup %1722 }
 0x5da   :  { %v593_v13 = vadd.f32 1.0, %v1723_v12 }
 0x5dc   :  { %1724 = vrcp.f32 %v593_v13  ;;  %v605_v28 = vand.u32 2147483648, %v593_v13  ;;  %vm599_vm1 = vweird.f32 %v593_v13  ;;  %v603_v29 = vand.u32 2147483647, %v593_v13 }
 0x5dd   :  { %1726 = vpow2.f32 %v1638_v14 }
 0x5de   :  { %v606_v31 = vor.u32 1.1754944e-38, %v605_v28  ;;  %vm604_vm4 = vcmp.eq.f32.partialorder %v603_v29, 8.507059e+37 }
 0x5e2   :  { %v1725_v16 = vpop.eup %1724 }
 0x5e3   :  { %v595_v18 = vmul.f32 %v1725_v16, %v593_v13  ;;  %v1727_v20 = vpop.eup %1726  ;;  %vm600_vm0 = vweird.f32 %v1725_v16 }
 0x5e4   :  { %v532_v22 = vadd.f32 1.0, %v1727_v20  ;;  %vm601_vm2 = vmor %vm599_vm1, %vm600_vm0  ;;  %vm1515_vm1 = vcmask 1041408  }
 0x5e5   :  { %v596_v19 = vsub.f32 1.0, %v595_v18 }
 0x5e6   :  { %1728 = vrcp.f32 %v532_v22  ;;  %v544_v40 = vand.u32 2147483648, %v532_v22  ;;  %vm538_vm6 = vweird.f32 %v532_v22  ;;  %v542_v42 = vand.u32 2147483647, %v532_v22 }
 0x5e7   :  { %v597_v21 = vmul.f32 %v1725_v16, %v596_v19 }
 0x5e8   :  { %v545_v49 = vor.u32 1.1754944e-38, %v544_v40  ;;  %vm543_vm8 = vcmp.eq.f32.partialorder %v542_v42, 8.507059e+37 }
 0x5e9   :  { %v598_v23 = vadd.f32 %v1725_v16, %v597_v21 }
 0x5eb   :  { %v602_v30 = vsel %vm601_vm2, %v1725_v16, %v598_v23  ;;  %vm1517_vm2 = vcmask 1043456  }
 0x5ec   :  { %v607_v32 = vsel %vm604_vm4, %v606_v31, %v602_v30  ;;  %v1729_v34 = vpop.eup %1728 }
 0x5ed   :  { %v534_v36 = vmul.f32 %v1729_v34, %v532_v22  ;;  %vm539_vm5 = vweird.f32 %v1729_v34  ;;  %v613_v57 = vmul.f32 %v611_v55, %v607_v32 }
 0x5ee   :  { %vm540_vm7 = vmor %vm538_vm6, %vm539_vm5 }
 0x5ef   :  { %v535_v37 = vsub.f32 1.0, %v534_v36 }
 0x5f1   :  { %v536_v38 = vmul.f32 %v1729_v34, %v535_v37 }
 0x5f3   :  { %v537_v39 = vadd.f32 %v1729_v34, %v536_v38 }
 0x5f5   :  { %v541_v44 = vsel %vm540_vm7, %v1729_v34, %v537_v39 }
 0x5f6   :  { %v546_v52 = vsel %vm543_vm8, %v545_v49, %v541_v44 }
 0x5f7   :  { %v549_v56 = vmul.f32 %v546_v52, %v2357_v51 }
 0x633   :  { %v616_v33 = vpop.permute.xlu2 %615 }
 0x634   :  { %v618_v35 = vmul.f32 %v616_v33, %v607_v32 }
 0x636   :  { %620 = vrot.lane.b32.xlu1 %v618_v35, %s2111_s2 }
 0x64a   :  { %v552_v50 = vpop.permute.xlu0 %551 }
 0x64b   :  { %v554_v43 = vmul.f32 %v552_v50, %v546_v52 }
 0x64d   :  { %556 = vrot.lane.b32.xlu2 %v554_v43, %s2111_s2 }
 0x6a7   :  { %v557_v58 = vpop.permute.xlu2 %556 }
 0x6a8   :  { %v621_v59 = vpop.permute.xlu1 %620  ;;  %v2392_v60 = vadd.f32 %v557_v58, %v549_v56 }
 0x6a9   :  { %v2394_v62 = vadd.f32 %v621_v59, %v613_v57 }
 0x6aa   :  { %1730 = vtanh.f32 %v2392_v60 }
 0x6ab   :  { %1732 = vtanh.f32 %v2394_v62 }
 0x6b0   :  { %v1731_v63 = vpop.eup %1730 }
 0x6b1   :  { %v1733_v0 = vpop.eup %1732  ;;  %562 = vrot.lane.b32.xlu1 %v1731_v63, %s2111_s2 }
 0x6b2   :  { %626 = vrot.lane.b32.xlu0 %v1733_v0, %s2111_s2 }
 0x723   :  { %v563_v41 = vpop.permute.xlu1 %562 }
 0x724   :  { %v627_v1 = vpop.permute.xlu0 %626  ;;  %v2400_v51 = vmul.f32 %v563_v41, %v546_v52  ;;  %v764_v41 = vrot.slane %v2394_v62, 6 }
 0x725   :  { %v629_v2 = vmul.f32 %v627_v1, %v607_v32 }
 0x726   :  { %631 = vrot.lane.b32.xlu0 %v2400_v51, %s2113_s5 }
 0x727   :  { %v656_v5 = vrot.slane %v629_v2, 4 }
 0x729   :  { %657 = vrot.lane.b32.xlu2 %v656_v5, %s2113_s5 }
 0x783   :  { %v658_v8 = vpop.permute.xlu2 %657 }
 0x784   :  { %1642 = vmatmul.msk.f32.vlgmr.msrb.gmra.mxu3 %vm257_vm3, %v658_v8  ;;  %1644 = vmatmul.msk.f32.vlgmr.msra.gmra.mxu0 %vm257_vm3, %v658_v8 }
 0x785   :  { %1102 = vmatpush.msrb.mxu3 %v2278_v24  ;;  %1128 = vmatpush.msra.mxu0 %v2308_v45 }
 0x787   :  { %1103 = vmatpush.msrb.mxu3 %v2282_v25  ;;  %1129 = vmatpush.msra.mxu0 %v2310_v46 }
 0x789   :  { %1104 = vmatpush.msrb.mxu3 %v2284_v26  ;;  %1130 = vmatpush.msra.mxu0 %v2314_v47 }
 0x78b   :  { %1105 = vmatpush.msrb.mxu3 %v2290_v27  ;;  %1131 = vmatpush.msra.mxu0 %v2318_v48 }
 0x798   :  { %v632_v9 = vpop.permute.xlu0 %631 }
 0x799   :  { %1641 = vmatmul.msk.f32.vlgmr.msra.gmra.mxu2 %vm257_vm3, %v632_v9 }
 0x79a   :  { %1033 = vmatpush.msra.mxu2 %v2238_v3 }
 0x79c   :  { %1034 = vmatpush.msra.mxu2 %v2241_v4 }
 0x79e   :  { %1035 = vmatpush.msra.mxu2 %v2243_v6 }
 0x7a0   :  { %1036 = vmatpush.msra.mxu2 %v2246_v7 }
 0x801   :  { %v736_v10 = vpop.f32.mrf.mxu0 }
 0x802   :  { %v740_v11 = vrot.slane %v736_v10, 2 }
 0x804   :  { %v742_v12 = vadd.f32 %v740_v11, %v2272_v17 }
 0x806   :  { %1734 = vtanh.f32 %v742_v12  ;;  %v1645_v21 = vmul.f32 -1.442695, %v742_v12 }
 0x807   :  { %v678_v16 = vpop.f32.mrf.mxu3 }
 0x80c   :  { %v1735_v13 = vpop.eup %1734 }
 0x80d   :  { %768 = vrot.lane.b32.xlu1 %v1735_v13, %s2111_s2 }
 0x81c   :  { %v652_v14 = vpop.f32.mrf.mxu2 }
 0x81d   :  { %v679_v18 = vadd.f32 %v678_v16, %v652_v14 }
 0x81f   :  { %v681_v19 = vadd.f32 %v2342_v53, %v679_v18 }
 0x821   :  { %1736 = vtanh.f32 %v681_v19  ;;  %v1643_v22 = vmul.f32 -1.442695, %v681_v19 }
 0x822   :  { %1738 = vpow2.f32 %v1645_v21 }
 0x823   :  { %1740 = vpow2.f32 %v1643_v22 }
 0x827   :  { %v1737_v20 = vpop.eup %1736 }
 0x828   :  { %704 = vrot.lane.b32.xlu2 %v1737_v20, %s2111_s2  ;;  %v1739_v23 = vpop.eup %1738 }
 0x829   :  { %v1741_v28 = vpop.eup %1740  ;;  %v746_v17 = vadd.f32 1.0, %v1739_v23 }
 0x82a   :  { %v685_v29 = vadd.f32 1.0, %v1741_v28 }
 0x82b   :  { %1742 = vrcp.f32 %v746_v17  ;;  %v758_v39 = vand.u32 2147483648, %v746_v17  ;;  %vm752_vm10 = vweird.f32 %v746_v17  ;;  %v756_v40 = vand.u32 2147483647, %v746_v17 }
 0x82c   :  { %1744 = vrcp.f32 %v685_v29  ;;  %v697_v49 = vand.u32 2147483648, %v685_v29  ;;  %vm691_vm13 = vweird.f32 %v685_v29  ;;  %v695_v52 = vand.u32 2147483647, %v685_v29 }
 0x82d   :  { %v759_v50 = vor.u32 1.1754944e-38, %v758_v39  ;;  %vm757_vm14 = vcmp.eq.f32.partialorder %v756_v40, 8.507059e+37 }
 0x82e   :  { %v698_v58 = vor.u32 1.1754944e-38, %v697_v49  ;;  %vm696_vm0 = vcmp.eq.f32.partialorder %v695_v52, 8.507059e+37 }
 0x831   :  { %v1743_v30 = vpop.eup %1742 }
 0x832   :  { %v1745_v31 = vpop.eup %1744  ;;  %v748_v32 = vmul.f32 %v1743_v30, %v746_v17  ;;  %vm753_vm9 = vweird.f32 %v1743_v30 }
 0x833   :  { %v687_v33 = vmul.f32 %v1745_v31, %v685_v29  ;;  %vm754_vm11 = vmor %vm752_vm10, %vm753_vm9  ;;  %vm692_vm12 = vweird.f32 %v1745_v31 }
 0x834   :  { %v749_v34 = vsub.f32 1.0, %v748_v32  ;;  %vm693_vm15 = vmor %vm691_vm13, %vm692_vm12  ;;  %vm1519_vm12 = vcmask 1045504  }
 0x835   :  { %v688_v35 = vsub.f32 1.0, %v687_v33 }
 0x836   :  { %v750_v36 = vmul.f32 %v1743_v30, %v749_v34 }
 0x837   :  { %v689_v37 = vmul.f32 %v1745_v31, %v688_v35 }
 0x838   :  { %v751_v38 = vadd.f32 %v1743_v30, %v750_v36 }
 0x839   :  { %v690_v42 = vadd.f32 %v1745_v31, %v689_v37 }
 0x83a   :  { %v755_v44 = vsel %vm754_vm11, %v1743_v30, %v751_v38 }
 0x83b   :  { %v760_v55 = vsel %vm757_vm14, %v759_v50, %v755_v44  ;;  %v694_v56 = vsel %vm693_vm15, %v1745_v31, %v690_v42 }
 0x83c   :  { %v699_v63 = vsel %vm696_vm0, %v698_v58, %v694_v56  ;;  %v766_v1 = vmul.f32 %v764_v41, %v760_v55 }
 0x83d   :  { %v702_v8 = vmul.f32 %v699_v63, %v2392_v60  ;;  %v1503_v60 = vrot.slane %v2400_v51, 6 }
 0x83f   :  { %v1516_v20 = vsel %vm1515_vm1, %v2361_v54, %v1503_v60  ;;  %v2461_v54 = vadd.f32 %v2269_v15, %v2382_v61 }
 0x87f   :  { %v769_v43 = vpop.permute.xlu1 %768 }
 0x880   :  { %v771_v57 = vmul.f32 %v769_v43, %v760_v55 }
 0x882   :  { %773 = vrot.lane.b32.xlu0 %v771_v57, %s2111_s2  ;;  %v705_v59 = vpop.permute.xlu2 %704 }
 0x883   :  { %v707_v0 = vmul.f32 %v705_v59, %v699_v63 }
 0x885   :  { %709 = vrot.lane.b32.xlu1 %v707_v0, %s2111_s2 }
 0x8f4   :  { %v774_v2 = vpop.permute.xlu0 %773 }
 0x8f5   :  { %v2427_v5 = vadd.f32 %v774_v2, %v766_v1 }
 0x8f7   :  { %1746 = vtanh.f32 %v2427_v5  ;;  %v710_v9 = vpop.permute.xlu1 %709 }
 0x8f8   :  { %v2431_v10 = vadd.f32 %v710_v9, %v702_v8 }
 0x8fa   :  { %1748 = vtanh.f32 %v2431_v10 }
 0x8fd   :  { %v1747_v11 = vpop.eup %1746 }
 0x8fe   :  { %779 = vrot.lane.b32.xlu2 %v1747_v11, %s2111_s2 }
 0x900   :  { %v1749_v12 = vpop.eup %1748 }
 0x901   :  { %715 = vrot.lane.b32.xlu0 %v1749_v12, %s2111_s2 }
 0x958   :  { %v780_v62 = vpop.permute.xlu2 %779 }
 0x959   :  { %v782_v13 = vmul.f32 %v780_v62, %v760_v55 }
 0x95b   :  { %v809_v16 = vrot.slane %v782_v13, 6  ;;  %v914_v13 = vrot.slane %v2427_v5, 6 }
 0x95d   :  { %810 = vrot.lane.b32.xlu1 %v809_v16, %s2113_s5 }
 0x973   :  { %v716_v14 = vpop.permute.xlu0 %715 }
 0x974   :  { %v718_v18 = vmul.f32 %v716_v14, %v699_v63 }
 0x976   :  { %v1505_v19 = vrot.slane %v718_v18, 4  ;;  %784 = vrot.lane.b32.xlu2 %v718_v18, %s2113_s5 }
 0x978   :  { %v2442_v21 = vsel %vm1517_vm2, %v1516_v20, %v1505_v19 }
 0x9cf   :  { %v811_v22 = vpop.permute.xlu1 %810 }
 0x9d0   :  { %1647 = vmatmul.msk.f32.vlgmr.msrb.gmra.mxu2 %vm257_vm3, %v811_v22  ;;  %1649 = vmatmul.msk.f32.vlgmr.msra.gmra.mxu3 %vm257_vm3, %v811_v22  ;;  %v785_v23 = vpop.permute.xlu2 %784 }
 0x9d1   :  { %1646 = vmatmul.msk.f32.vlgmr.msra.gmra.mxu1 %vm257_vm3, %v785_v23  ;;  %1255 = vmatpush.msrb.mxu2 %v2278_v24 }
 0x9d2   :  { %1186 = vmatpush.msra.mxu1 %v2238_v3  ;;  %1281 = vmatpush.msra.mxu3 %v2308_v45 }
 0x9d3   :  { %1256 = vmatpush.msrb.mxu2 %v2282_v25 }
 0x9d4   :  { %1187 = vmatpush.msra.mxu1 %v2241_v4  ;;  %1282 = vmatpush.msra.mxu3 %v2310_v46 }
 0x9d5   :  { %1257 = vmatpush.msrb.mxu2 %v2284_v26 }
 0x9d6   :  { %1188 = vmatpush.msra.mxu1 %v2243_v6  ;;  %1283 = vmatpush.msra.mxu3 %v2314_v47 }
 0x9d7   :  { %1258 = vmatpush.msrb.mxu2 %v2290_v27 }
 0x9d8   :  { %1189 = vmatpush.msra.mxu1 %v2246_v7  ;;  %1284 = vmatpush.msra.mxu3 %v2318_v48 }
 0xa4e   :  { %v805_v51 = vpop.f32.mrf.mxu1 }
 0xa53   :  { %v831_v28 = vpop.f32.mrf.mxu2  ;;  %v889_v17 = vpop.f32.mrf.mxu3 }
 0xa54   :  { %v832_v29 = vadd.f32 %v831_v28, %v805_v51  ;;  %v892_v30 = vadd.f32 %v889_v17, %v2461_v54 }
 0xa56   :  { %v834_v31 = vadd.f32 %v2342_v53, %v832_v29  ;;  %1750 = vtanh.f32 %v892_v30  ;;  %v1650_v34 = vmul.f32 -1.442695, %v892_v30 }
 0xa58   :  { %1752 = vtanh.f32 %v834_v31  ;;  %v1648_v35 = vmul.f32 -1.442695, %v834_v31 }
 0xa59   :  { %1754 = vpow2.f32 %v1650_v34 }
 0xa5a   :  { %1756 = vpow2.f32 %v1648_v35 }
 0xa5c   :  { %v1751_v32 = vpop.eup %1750 }
 0xa5d   :  { %918 = vrot.lane.b32.xlu0 %v1751_v32, %s2111_s2 }
 0xa5e   :  { %v1753_v33 = vpop.eup %1752 }
 0xa5f   :  { %857 = vrot.lane.b32.xlu1 %v1753_v33, %s2111_s2  ;;  %v1755_v15 = vpop.eup %1754 }
 0xa60   :  { %v1757_v61 = vpop.eup %1756  ;;  %v896_v36 = vadd.f32 1.0, %v1755_v15 }
 0xa61   :  { %v838_v37 = vadd.f32 1.0, %v1757_v61 }
 0xa62   :  { %1758 = vrcp.f32 %v896_v36  ;;  %v908_v55 = vand.u32 2147483648, %v896_v36  ;;  %vm902_vm5 = vweird.f32 %v896_v36  ;;  %v906_v56 = vand.u32 2147483647, %v896_v36 }
 0xa63   :  { %1760 = vrcp.f32 %v838_v37  ;;  %v850_v58 = vand.u32 2147483648, %v838_v37  ;;  %vm844_vm8 = vweird.f32 %v838_v37  ;;  %v848_v63 = vand.u32 2147483647, %v838_v37 }
 0xa64   :  { %v909_v0 = vor.u32 1.1754944e-38, %v908_v55  ;;  %vm907_vm10 = vcmp.eq.f32.partialorder %v906_v56, 8.507059e+37 }
 0xa65   :  { %v851_v8 = vor.u32 1.1754944e-38, %v850_v58  ;;  %vm849_vm11 = vcmp.eq.f32.partialorder %v848_v63, 8.507059e+37 }
 0xa68   :  { %v1759_v38 = vpop.eup %1758 }
 0xa69   :  { %v1761_v39 = vpop.eup %1760  ;;  %v898_v40 = vmul.f32 %v1759_v38, %v896_v36  ;;  %vm903_vm4 = vweird.f32 %v1759_v38 }
 0xa6a   :  { %v840_v42 = vmul.f32 %v1761_v39, %v838_v37  ;;  %vm845_vm6 = vweird.f32 %v1761_v39  ;;  %vm904_vm7 = vmor %vm902_vm5, %vm903_vm4 }
 0xa6b   :  { %v899_v44 = vsub.f32 1.0, %v898_v40  ;;  %vm846_vm9 = vmor %vm844_vm8, %vm845_vm6 }
 0xa6c   :  { %v841_v49 = vsub.f32 1.0, %v840_v42 }
 0xa6d   :  { %v900_v50 = vmul.f32 %v1759_v38, %v899_v44 }
 0xa6e   :  { %v842_v52 = vmul.f32 %v1761_v39, %v841_v49 }
 0xa6f   :  { %v901_v43 = vadd.f32 %v1759_v38, %v900_v50 }
 0xa70   :  { %v843_v57 = vadd.f32 %v1761_v39, %v842_v52 }
 0xa71   :  { %v905_v59 = vsel %vm904_vm7, %v1759_v38, %v901_v43 }
 0xa72   :  { %v847_v41 = vsel %vm846_vm9, %v1761_v39, %v843_v57  ;;  %v910_v1 = vsel %vm907_vm10, %v909_v0, %v905_v59 }
 0xa73   :  { %v852_v12 = vsel %vm849_vm11, %v851_v8, %v847_v41  ;;  %v916_v16 = vmul.f32 %v914_v13, %v910_v1 }
 0xa74   :  { %v855_v19 = vmul.f32 %v852_v12, %v2431_v10 }
 0xacf   :  { %v919_v2 = vpop.permute.xlu0 %918 }
 0xad0   :  { %v921_v9 = vmul.f32 %v919_v2, %v910_v1 }
 0xad1   :  { %v858_v11 = vpop.permute.xlu1 %857 }
 0xad2   :  { %v860_v62 = vmul.f32 %v858_v11, %v852_v12  ;;  %923 = vrot.lane.b32.xlu2 %v921_v9, %s2111_s2 }
 0xad4   :  { %862 = vrot.lane.b32.xlu0 %v860_v62, %s2111_s2 }
 0xb2c   :  { %v924_v60 = vpop.permute.xlu2 %923 }
 0xb2d   :  { %v2470_v14 = vadd.f32 %v924_v60, %v916_v16 }
 0xb2f   :  { %1762 = vtanh.f32 %v2470_v14  ;;  %v1066_v9 = vrot.slane %v2470_v14, 6 }
 0xb35   :  { %v1763_v18 = vpop.eup %1762 }
 0xb36   :  { %929 = vrot.lane.b32.xlu1 %v1763_v18, %s2111_s2 }
 0xb46   :  { %v863_v20 = vpop.permute.xlu0 %862 }
 0xb47   :  { %v2475_v22 = vadd.f32 %v863_v20, %v855_v19 }
 0xb49   :  { %1764 = vtanh.f32 %v2475_v22 }
 0xb4f   :  { %v1765_v23 = vpop.eup %1764 }
 0xb50   :  { %868 = vrot.lane.b32.xlu2 %v1765_v23, %s2111_s2 }
 0xba8   :  { %v930_v5 = vpop.permute.xlu1 %929 }
 0xba9   :  { %v932_v51 = vmul.f32 %v930_v5, %v910_v1 }
 0xbaa   :  { %v869_v28 = vpop.permute.xlu2 %868 }
 0xbab   :  { %v871_v17 = vmul.f32 %v869_v28, %v852_v12  ;;  %959 = vrot.lane.b32.xlu0 %v932_v51, %s2113_s5 }
 0xbad   :  { %v1507_v29 = vrot.slane %v871_v17, 2  ;;  %934 = vrot.lane.b32.xlu1 %v871_v17, %s2113_s5 }
 0xbaf   :  { %v2483_v10 = vsel %vm1519_vm12, %v2442_v21, %v1507_v29 }
 0xc1d   :  { %v960_v30 = vpop.permute.xlu0 %959 }
 0xc1e   :  { %1652 = vmatmul.msk.f32.vlgmr.msrb.gmra.mxu1 %vm257_vm3, %v960_v30  ;;  %1654 = vmatmul.msk.f32.vlgmr.msra.gmra.mxu2 %vm257_vm3, %v960_v30 }
 0xc1f   :  { %v935_v31 = vpop.permute.xlu1 %934  ;;  %1434 = vmatpush.msra.mxu2 %v2308_v45  ;;  %1408 = vmatpush.msrb.mxu1 %v2278_v24 }
 0xc20   :  { %1651 = vmatmul.msk.f32.vlgmr.msrb.gmra.mxu0 %vm257_vm3, %v935_v31 }
 0xc21   :  { %1339 = vmatpush.msrb.mxu0 %v2238_v3  ;;  %1435 = vmatpush.msra.mxu2 %v2310_v46 }
 0xc22   :  { %1409 = vmatpush.msrb.mxu1 %v2282_v25 }
 0xc23   :  { %1340 = vmatpush.msrb.mxu0 %v2241_v4  ;;  %1436 = vmatpush.msra.mxu2 %v2314_v47 }
 0xc24   :  { %1410 = vmatpush.msrb.mxu1 %v2284_v26 }
 0xc25   :  { %1341 = vmatpush.msrb.mxu0 %v2243_v6  ;;  %1437 = vmatpush.msra.mxu2 %v2318_v48 }
 0xc26   :  { %1411 = vmatpush.msrb.mxu1 %v2290_v27 }
 0xc27   :  { %1342 = vmatpush.msrb.mxu0 %v2246_v7 }
 0xc9b   :  { %v980_v24 = vpop.f32.mrf.mxu1 }
 0xc9d   :  { %v955_v3 = vpop.f32.mrf.mxu0 }
 0xc9e   :  { %v981_v45 = vadd.f32 %v980_v24, %v955_v3 }
 0xca0   :  { %v983_v46 = vadd.f32 %v2342_v53, %v981_v45 }
 0xca1   :  { %v1038_v25 = vpop.f32.mrf.mxu2 }
 0xca2   :  { %1766 = vtanh.f32 %v983_v46  ;;  %v1042_v4 = vrot.slane %v1038_v25, 6  ;;  %v1653_v27 = vmul.f32 -1.442695, %v983_v46 }
 0xca4   :  { %v1044_v47 = vadd.f32 %v1042_v4, %v2461_v54 }
 0xca6   :  { %1768 = vtanh.f32 %v1044_v47  ;;  %v1655_v33 = vmul.f32 -1.442695, %v1044_v47 }
 0xca7   :  { %1770 = vpow2.f32 %v1653_v27 }
 0xca8   :  { %v1767_v26 = vpop.eup %1766 }
 0xca9   :  { %1006 = vrot.lane.b32.xlu2 %v1767_v26, %s2111_s2 }
 0xcac   :  { %v1769_v6 = vpop.eup %1768 }
 0xcad   :  { %1070 = vrot.lane.b32.xlu0 %v1769_v6, %s2111_s2  ;;  %v1771_v7 = vpop.eup %1770 }
 0xcae   :  { %v987_v48 = vadd.f32 1.0, %v1771_v7 }
 0xcb0   :  { %1772 = vrcp.f32 %v987_v48  ;;  %v999_v36 = vand.u32 2147483648, %v987_v48  ;;  %vm993_vm14 = vweird.f32 %v987_v48  ;;  %v997_v37 = vand.u32 2147483647, %v987_v48 }
 0xcb1   :  { %1774 = vpow2.f32 %v1655_v33 }
 0xcb2   :  { %v1000_v40 = vor.u32 1.1754944e-38, %v999_v36  ;;  %vm998_vm0 = vcmp.eq.f32.partialorder %v997_v37, 8.507059e+37 }
 0xcb6   :  { %v1773_v21 = vpop.eup %1772 }
 0xcb7   :  { %v989_v32 = vmul.f32 %v1773_v21, %v987_v48  ;;  %v1775_v15 = vpop.eup %1774  ;;  %vm994_vm13 = vweird.f32 %v1773_v21 }
 0xcb8   :  { %v1048_v38 = vadd.f32 1.0, %v1775_v15  ;;  %vm995_vm15 = vmor %vm993_vm14, %vm994_vm13 }
 0xcb9   :  { %v990_v34 = vsub.f32 1.0, %v989_v32 }
 0xcba   :  { %1776 = vrcp.f32 %v1048_v38  ;;  %v1060_v57 = vand.u32 2147483648, %v1048_v38  ;;  %vm1054_vm5 = vweird.f32 %v1048_v38  ;;  %v1058_v58 = vand.u32 2147483647, %v1048_v38 }
 0xcbb   :  { %v991_v35 = vmul.f32 %v1773_v21, %v990_v34 }
 0xcbc   :  { %v1061_v63 = vor.u32 1.1754944e-38, %v1060_v57  ;;  %vm1059_vm7 = vcmp.eq.f32.partialorder %v1058_v58, 8.507059e+37 }
 0xcbd   :  { %v992_v61 = vadd.f32 %v1773_v21, %v991_v35 }
 0xcbf   :  { %v996_v39 = vsel %vm995_vm15, %v1773_v21, %v992_v61 }
 0xcc0   :  { %v1001_v44 = vsel %vm998_vm0, %v1000_v40, %v996_v39  ;;  %v1777_v50 = vpop.eup %1776 }
 0xcc1   :  { %v1050_v52 = vmul.f32 %v1777_v50, %v1048_v38  ;;  %vm1055_vm4 = vweird.f32 %v1777_v50  ;;  %v1004_v2 = vmul.f32 %v1001_v44, %v2475_v22 }
 0xcc2   :  { %vm1056_vm6 = vmor %vm1054_vm5, %vm1055_vm4 }
 0xcc3   :  { %v1051_v43 = vsub.f32 1.0, %v1050_v52 }
 0xcc5   :  { %v1052_v55 = vmul.f32 %v1777_v50, %v1051_v43 }
 0xcc7   :  { %v1053_v56 = vadd.f32 %v1777_v50, %v1052_v55 }
 0xcc9   :  { %v1057_v59 = vsel %vm1056_vm6, %v1777_v50, %v1053_v56 }
 0xcca   :  { %v1062_v41 = vsel %vm1059_vm7, %v1061_v63, %v1057_v59 }
 0xccb   :  { %v1068_v12 = vmul.f32 %v1066_v9, %v1062_v41 }
 0xd03   :  { %v1007_v42 = vpop.permute.xlu2 %1006 }
 0xd04   :  { %v1009_v49 = vmul.f32 %v1007_v42, %v1001_v44 }
 0xd06   :  { %1011 = vrot.lane.b32.xlu1 %v1009_v49, %s2111_s2 }
 0xd1f   :  { %v1071_v0 = vpop.permute.xlu0 %1070 }
 0xd20   :  { %v1073_v1 = vmul.f32 %v1071_v0, %v1062_v41 }
 0xd22   :  { %1075 = vrot.lane.b32.xlu2 %v1073_v1, %s2111_s2 }
 0xd78   :  { %v1012_v8 = vpop.permute.xlu1 %1011 }
 0xd79   :  { %v2508_v11 = vadd.f32 %v1012_v8, %v1004_v2 }
 0xd7b   :  { %1778 = vtanh.f32 %v2508_v11 }
 0xd7c   :  { %v1076_v62 = vpop.permute.xlu2 %1075 }
 0xd7d   :  { %v2511_v13 = vadd.f32 %v1076_v62, %v1068_v12 }
 0xd7f   :  { %1780 = vtanh.f32 %v2511_v13  ;;  %v1219_v0 = vrot.slane %v2511_v13, 6 }
 0xd81   :  { %v1779_v16 = vpop.eup %1778 }
 0xd82   :  { %1017 = vrot.lane.b32.xlu0 %v1779_v16, %s2111_s2 }
 0xd85   :  { %v1781_v60 = vpop.eup %1780 }
 0xd86   :  { %1081 = vrot.lane.b32.xlu1 %v1781_v60, %s2111_s2 }
 0xdf4   :  { %v1018_v18 = vpop.permute.xlu0 %1017 }
 0xdf5   :  { %v2516_v19 = vmul.f32 %v1018_v18, %v1001_v44 }
 0xdf7   :  { %1086 = vrot.lane.b32.xlu2 %v2516_v19, %s2113_s5 }
 0xdf8   :  { %v1082_v14 = vpop.permute.xlu1 %1081 }
 0xdf9   :  { %v1084_v20 = vmul.f32 %v1082_v14, %v1062_v41 }
 0xdfb   :  { %v1111_v22 = vrot.slane %v1084_v20, 2 }
 0xdfd   :  { %1112 = vrot.lane.b32.xlu0 %v1111_v22, %s2113_s5 }
 0xe51   :  { %v1087_v23 = vpop.permute.xlu2 %1086 }
 0xe52   :  { %1656 = vmatmul.msk.f32.vlgmr.msrb.gmra.mxu3 %vm257_vm3, %v1087_v23 }
 0xe6f   :  { %v1113_v5 = vpop.permute.xlu0 %1112 }
 0xe70   :  { %1657 = vmatmul.msk.f32.vlgmr.msra.gmra.mxu0 %vm257_vm3, %v1113_v5  ;;  %1659 = vmatmul.msk.f32.vlgmr.msra.gmra.mxu1 %vm257_vm3, %v1113_v5 }
 0xed5   :  { %v1107_v51 = vpop.f32.mrf.mxu3 }
 0xeed   :  { %v1133_v28 = vpop.f32.mrf.mxu0  ;;  %v1191_v17 = vpop.f32.mrf.mxu1 }
 0xeee   :  { %v1134_v29 = vadd.f32 %v1133_v28, %v1107_v51  ;;  %v1195_v30 = vrot.slane %v1191_v17, 4  ;;  %v2552_v51 = vld [vmem:[%s2619_s9] ss:$0 sm:$0xff] }
 0xef0   :  { %v1136_v31 = vadd.f32 %v2342_v53, %v1134_v29  ;;  %v1197_v24 = vadd.f32 %v1195_v30, %v2461_v54 }
 0xef2   :  { %1782 = vtanh.f32 %v1136_v31  ;;  %v1658_v46 = vmul.f32 -1.442695, %v1136_v31  ;;  %v1660_v26 = vmul.f32 -1.442695, %v1197_v24 }
 0xef3   :  { %1784 = vtanh.f32 %v1197_v24 }
 0xef4   :  { %1786 = vpow2.f32 %v1658_v46 }
 0xef8   :  { %v1783_v3 = vpop.eup %1782 }
 0xef9   :  { %v1785_v45 = vpop.eup %1784  ;;  %1159 = vrot.lane.b32.xlu2 %v1783_v3, %s2111_s2 }
 0xefa   :  { %1223 = vrot.lane.b32.xlu1 %v1785_v45, %s2111_s2  ;;  %v1787_v25 = vpop.eup %1786 }
 0xefb   :  { %v1140_v4 = vadd.f32 1.0, %v1787_v25 }
 0xefd   :  { %1788 = vrcp.f32 %v1140_v4  ;;  %v1152_v32 = vand.u32 2147483648, %v1140_v4  ;;  %vm1146_vm9 = vweird.f32 %v1140_v4  ;;  %v1150_v33 = vand.u32 2147483647, %v1140_v4 }
 0xefe   :  { %1790 = vpow2.f32 %v1660_v26 }
 0xeff   :  { %v1153_v35 = vor.u32 1.1754944e-38, %v1152_v32  ;;  %vm1151_vm11 = vcmp.eq.f32.partialorder %v1150_v33, 8.507059e+37 }
 0xf03   :  { %v1789_v47 = vpop.eup %1788 }
 0xf04   :  { %v1142_v6 = vmul.f32 %v1789_v47, %v1140_v4  ;;  %v1791_v7 = vpop.eup %1790  ;;  %vm1147_vm8 = vweird.f32 %v1789_v47 }
 0xf05   :  { %v1201_v48 = vadd.f32 1.0, %v1791_v7  ;;  %vm1148_vm10 = vmor %vm1146_vm9, %vm1147_vm8 }
 0xf06   :  { %v1143_v53 = vsub.f32 1.0, %v1142_v6 }
 0xf07   :  { %1792 = vrcp.f32 %v1201_v48  ;;  %v1213_v44 = vand.u32 2147483648, %v1201_v48  ;;  %vm1207_vm14 = vweird.f32 %v1201_v48  ;;  %v1211_v49 = vand.u32 2147483647, %v1201_v48 }
 0xf08   :  { %v1144_v27 = vmul.f32 %v1789_v47, %v1143_v53 }
 0xf09   :  { %v1214_v52 = vor.u32 1.1754944e-38, %v1213_v44  ;;  %vm1212_vm0 = vcmp.eq.f32.partialorder %v1211_v49, 8.507059e+37 }
 0xf0a   :  { %v1145_v21 = vadd.f32 %v1789_v47, %v1144_v27 }
 0xf0c   :  { %v1149_v34 = vsel %vm1148_vm10, %v1789_v47, %v1145_v21 }
 0xf0d   :  { %v1154_v61 = vsel %vm1151_vm11, %v1153_v35, %v1149_v34  ;;  %v1793_v37 = vpop.eup %1792 }
 0xf0e   :  { %v1203_v38 = vmul.f32 %v1793_v37, %v1201_v48  ;;  %vm1208_vm13 = vweird.f32 %v1793_v37  ;;  %v1157_v57 = vmul.f32 %v1154_v61, %v2508_v11 }
 0xf0f   :  { %vm1209_vm15 = vmor %vm1207_vm14, %vm1208_vm13 }
 0xf10   :  { %v1204_v39 = vsub.f32 1.0, %v1203_v38 }
 0xf12   :  { %v1205_v40 = vmul.f32 %v1793_v37, %v1204_v39 }
 0xf14   :  { %v1206_v42 = vadd.f32 %v1793_v37, %v1205_v40 }
 0xf16   :  { %v1210_v50 = vsel %vm1209_vm15, %v1793_v37, %v1206_v42  ;;  %vm1483_vm15 = vcmask 261126  }
 0xf17   :  { %v1215_v55 = vsel %vm1212_vm0, %v1214_v52, %v1210_v50  ;;  %vm1495_vm0 = vcmask 254976  }
 0xf18   :  { %v1221_v41 = vmul.f32 %v1219_v0, %v1215_v55 }
 0xf53   :  { %v1160_v15 = vpop.permute.xlu2 %1159 }
 0xf54   :  { %v1162_v36 = vmul.f32 %v1160_v15, %v1154_v61 }
 0xf56   :  { %1164 = vrot.lane.b32.xlu1 %v1162_v36, %s2111_s2 }
 0xf6c   :  { %v1224_v43 = vpop.permute.xlu1 %1223 }
 0xf6d   :  { %v1226_v56 = vmul.f32 %v1224_v43, %v1215_v55 }
 0xf6f   :  { %1228 = vrot.lane.b32.xlu0 %v1226_v56, %s2111_s2 }
 0xfc8   :  { %v1165_v58 = vpop.permute.xlu1 %1164 }
 0xfc9   :  { %v2531_v59 = vadd.f32 %v1165_v58, %v1157_v57 }
 0xfcb   :  { %1794 = vtanh.f32 %v2531_v59 }
 0xfd1   :  { %v1795_v63 = vpop.eup %1794 }
 0xfd2   :  { %1170 = vrot.lane.b32.xlu0 %v1795_v63, %s2111_s2 }
 0xfe1   :  { %v1229_v1 = vpop.permute.xlu0 %1228 }
 0xfe2   :  { %v2536_v2 = vadd.f32 %v1229_v1, %v1221_v41 }
 0xfe4   :  { %1796 = vtanh.f32 %v2536_v2  ;;  %v1372_v49 = vrot.slane %v2536_v2, 6 }
 0xfea   :  { %v1797_v8 = vpop.eup %1796 }
 0xfeb   :  { %1234 = vrot.lane.b32.xlu2 %v1797_v8, %s2111_s2 }
0x1044   :  { %v1171_v9 = vpop.permute.xlu0 %1170 }
0x1045   :  { %v1235_v11 = vpop.permute.xlu2 %1234  ;;  %v2540_v12 = vmul.f32 %v1171_v9, %v1154_v61 }
0x1046   :  { %v1237_v62 = vmul.f32 %v1235_v11, %v1215_v55 }
0x1047   :  { %1239 = vrot.lane.b32.xlu2 %v2540_v12, %s2113_s5  ;;  %v1509_v2 = vrot.slane %v2540_v12, 6 }
0x1048   :  { %v1264_v16 = vrot.slane %v1237_v62, 4 }
0x104a   :  { %1265 = vrot.lane.b32.xlu1 %v1264_v16, %s2113_s5 }
0x10a1   :  { %v1240_v13 = vpop.permute.xlu2 %1239 }
0x10a2   :  { %1661 = vmatmul.msk.f32.vlgmr.msrb.gmra.mxu2 %vm257_vm3, %v1240_v13 }
0x10bc   :  { %v1266_v60 = vpop.permute.xlu1 %1265 }
0x10bd   :  { %1662 = vmatmul.msk.f32.vlgmr.msra.gmra.mxu3 %vm257_vm3, %v1266_v60  ;;  %1664 = vmatmul.msk.f32.vlgmr.msrb.gmra.mxu0 %vm257_vm3, %v1266_v60 }
0x1125   :  { %v1260_v22 = vpop.f32.mrf.mxu2 }
0x113a   :  { %v1344_v18 = vpop.f32.mrf.mxu0 }
0x113b   :  { %v1348_v14 = vrot.slane %v1344_v18, 2 }
0x113d   :  { %v1350_v20 = vadd.f32 %v1348_v14, %v2461_v54 }
0x113f   :  { %1798 = vtanh.f32 %v1350_v20  ;;  %v1665_v30 = vmul.f32 -1.442695, %v1350_v20 }
0x1140   :  { %v1286_v23 = vpop.f32.mrf.mxu3 }
0x1141   :  { %v1287_v5 = vadd.f32 %v1286_v23, %v1260_v22 }
0x1143   :  { %v1289_v28 = vadd.f32 %v2552_v51, %v1287_v5  ;;  %v1527_v5 = vld [vmem:[#allocation14 + $0x18] sm:$0xff] }
0x1144   :  { %1554 = vmatpush.msrb.mxu3 %v1527_v5 }
0x1145   :  { %v1799_v17 = vpop.eup %1798  ;;  %1800 = vtanh.f32 %v1289_v28  ;;  %v1663_v54 = vmul.f32 -1.442695, %v1289_v28  ;;  %v1526_v28 = vld [vmem:[#allocation14 + $0x10] sm:$0xff] }
0x1146   :  { %1376 = vrot.lane.b32.xlu0 %v1799_v17, %s2111_s2  ;;  %1802 = vpow2.f32 %v1665_v30  ;;  %v1525_v17 = vld [vmem:[#allocation14 + $0x8] sm:$0xff]  ;;  %1555 = vmatpush.msrb.mxu3 %v1526_v28 }
0x1147   :  { %1804 = vpow2.f32 %v1663_v54 }
0x1148   :  { %1556 = vmatpush.msrb.mxu3 %v1525_v17 }
0x114b   :  { %v1801_v29 = vpop.eup %1800 }
0x114c   :  { %1312 = vrot.lane.b32.xlu1 %v1801_v29, %s2111_s2  ;;  %v1803_v31 = vpop.eup %1802  ;;  %v1524_v29 = vld [vmem:[#allocation14] sm:$0xff] }
0x114d   :  { %v1354_v24 = vadd.f32 1.0, %v1803_v31  ;;  %v1805_v3 = vpop.eup %1804  ;;  %1557 = vmatpush.msrb.mxu3 %v1524_v29 }
0x114e   :  { %v1293_v45 = vadd.f32 1.0, %v1805_v3 }
0x114f   :  { %1806 = vrcp.f32 %v1354_v24  ;;  %v1366_v7 = vand.u32 2147483648, %v1354_v24  ;;  %vm1360_vm5 = vweird.f32 %v1354_v24  ;;  %v1364_v48 = vand.u32 2147483647, %v1354_v24 }
0x1150   :  { %1808 = vrcp.f32 %v1293_v45  ;;  %v1305_v61 = vand.u32 2147483648, %v1293_v45  ;;  %vm1299_vm9 = vweird.f32 %v1293_v45  ;;  %v1303_v37 = vand.u32 2147483647, %v1293_v45 }
0x1151   :  { %v1367_v33 = vor.u32 1.1754944e-38, %v1366_v7  ;;  %vm1365_vm7 = vcmp.eq.f32.partialorder %v1364_v48, 8.507059e+37  ;;  %v1691_v48 = vld [vmem:[%s2621_s11] ss:$0 sm:$0xff]  ;;  %s2114_s11 = smov [#allocation17]  }
0x1152   :  { %v1306_v39 = vor.u32 1.1754944e-38, %v1305_v61  ;;  %vm1304_vm11 = vcmp.eq.f32.partialorder %v1303_v37, 8.507059e+37  ;;  %s1584_s25 = sshll.u32 %s2114_s11, 4  ;;  %s1585_s25 = int_to_ptr.vmem [resolvable:$true] %s1584_s25 }
0x1155   :  { %v1807_v46 = vpop.eup %1806 }
0x1156   :  { %v1356_v25 = vmul.f32 %v1807_v46, %v1354_v24  ;;  %v1809_v4 = vpop.eup %1808  ;;  %vm1361_vm4 = vweird.f32 %v1807_v46 }
0x1157   :  { %v1295_v26 = vmul.f32 %v1809_v4, %v1293_v45  ;;  %vm1362_vm6 = vmor %vm1360_vm5, %vm1361_vm4  ;;  %vm1300_vm8 = vweird.f32 %v1809_v4 }
0x1158   :  { %v1357_v47 = vsub.f32 1.0, %v1356_v25  ;;  %vm1301_vm10 = vmor %vm1299_vm9, %vm1300_vm8 }
0x1159   :  { %v1296_v53 = vsub.f32 1.0, %v1295_v26 }
0x115a   :  { %v1358_v6 = vmul.f32 %v1807_v46, %v1357_v47 }
0x115b   :  { %v1297_v21 = vmul.f32 %v1809_v4, %v1296_v53 }
0x115c   :  { %v1359_v27 = vadd.f32 %v1807_v46, %v1358_v6 }
0x115d   :  { %v1298_v34 = vadd.f32 %v1809_v4, %v1297_v21 }
0x115e   :  { %v1363_v32 = vsel %vm1362_vm6, %v1807_v46, %v1359_v27 }
0x115f   :  { %v1368_v35 = vsel %vm1365_vm7, %v1367_v33, %v1363_v32  ;;  %v1302_v38 = vsel %vm1301_vm10, %v1809_v4, %v1298_v34 }
0x1160   :  { %v1307_v42 = vsel %vm1304_vm11, %v1306_v39, %v1302_v38  ;;  %v1374_v50 = vmul.f32 %v1372_v49, %v1368_v35 }
0x1161   :  { %v1310_v56 = vmul.f32 %v1307_v42, %v2531_v59  ;;  %v1521_v59 = vsel %vm1515_vm1, %v2516_v19, %v1509_v2 }
0x11b8   :  { %v1377_v15 = vpop.permute.xlu0 %1376 }
0x11b9   :  { %v1379_v36 = vmul.f32 %v1377_v15, %v1368_v35 }
0x11bb   :  { %1381 = vrot.lane.b32.xlu2 %v1379_v36, %s2111_s2 }
0x11be   :  { %v1313_v40 = vpop.permute.xlu1 %1312 }
0x11bf   :  { %v1315_v44 = vmul.f32 %v1313_v40, %v1307_v42 }
0x11c1   :  { %1317 = vrot.lane.b32.xlu0 %v1315_v44, %s2111_s2 }
0x1215   :  { %v1382_v52 = vpop.permute.xlu2 %1381 }
0x1216   :  { %v2560_v43 = vadd.f32 %v1382_v52, %v1374_v50 }
0x1218   :  { %1810 = vtanh.f32 %v2560_v43 }
0x121e   :  { %v1811_v55 = vpop.eup %1810 }
0x121f   :  { %1387 = vrot.lane.b32.xlu1 %v1811_v55, %s2111_s2 }
0x1233   :  { %v1318_v57 = vpop.permute.xlu0 %1317 }
0x1234   :  { %v1320_v58 = vadd.f32 %v1318_v57, %v1310_v56 }
0x1236   :  { %1812 = vtanh.f32 %v1320_v58 }
0x123c   :  { %v1813_v63 = vpop.eup %1812 }
0x123d   :  { %1323 = vrot.lane.b32.xlu2 %v1813_v63, %s2111_s2 }
0x1291   :  { %v1388_v0 = vpop.permute.xlu1 %1387 }
0x1292   :  { %v1390_v41 = vmul.f32 %v1388_v0, %v1368_v35 }
0x1294   :  { %v1417_v1 = vrot.slane %v1390_v41, 6 }
0x1296   :  { %1418 = vrot.lane.b32.xlu0 %v1417_v1, %s2113_s5 }
0x1297   :  { %v1324_v8 = vpop.permute.xlu2 %1323 }
0x1298   :  { %v1326_v9 = vmul.f32 %v1324_v8, %v1307_v42 }
0x129a   :  { %v1511_v11 = vrot.slane %v1326_v9, 4  ;;  %1392 = vrot.lane.b32.xlu1 %v1326_v9, %s2113_s5 }
0x129c   :  { %v1522_v62 = vsel %vm1517_vm2, %v1521_v59, %v1511_v11 }
0x1308   :  { %v1419_v16 = vpop.permute.xlu0 %1418 }
0x1309   :  { %1667 = vmatmul.msk.f32.vlgmr.msra.gmra.mxu2 %vm257_vm3, %v1419_v16 }
0x130c   :  { %v1393_v13 = vpop.permute.xlu1 %1392 }
0x130d   :  { %1666 = vmatmul.msk.f32.vlgmr.msrb.gmra.mxu1 %vm257_vm3, %v1393_v13 }
0x138a   :  { %v1413_v60 = vpop.f32.mrf.mxu1 }
0x138c   :  { %v1439_v18 = vpop.f32.mrf.mxu2 }
0x138d   :  { %v1440_v14 = vadd.f32 %v1439_v18, %v1413_v60 }
0x138f   :  { %v1442_v12 = vadd.f32 %v2552_v51, %v1440_v14 }
0x1391   :  { %1814 = vtanh.f32 %v1442_v12  ;;  %v1668_v19 = vmul.f32 -1.442695, %v1442_v12 }
0x1393   :  { %1816 = vpow2.f32 %v1668_v19 }
0x1397   :  { %v1815_v20 = vpop.eup %1814 }
0x1398   :  { %1465 = vrot.lane.b32.xlu2 %v1815_v20, %s2111_s2 }
0x1399   :  { %v1817_v22 = vpop.eup %1816 }
0x139a   :  { %v1446_v23 = vadd.f32 1.0, %v1817_v22 }
0x139c   :  { %1818 = vrcp.f32 %v1446_v23  ;;  %vm1452_vm2 = vweird.f32 %v1446_v23  ;;  %v1456_v3 = vand.u32 2147483647, %v1446_v23 }
0x139e   :  { %vm1457_vm14 = vcmp.eq.f32.partialorder %v1456_v3, 8.507059e+37 }
0x13a0   :  { %1534 = vrot.lane.b32.xlu2 %v2483_v10, %s2113_s5  ;;  %v1458_v10 = vand.u32 2147483648, %v1446_v23 }
0x13a2   :  { %v1819_v51 = vpop.eup %1818  ;;  %v1459_v46 = vor.u32 1.1754944e-38, %v1458_v10 }
0x13a3   :  { %v1448_v30 = vmul.f32 %v1819_v51, %v1446_v23  ;;  %vm1453_vm1 = vweird.f32 %v1819_v51 }
0x13a4   :  { %vm1454_vm13 = vmor %vm1452_vm2, %vm1453_vm1 }
0x13a5   :  { %v1449_v54 = vsub.f32 1.0, %v1448_v30 }
0x13a7   :  { %v1450_v31 = vmul.f32 %v1819_v51, %v1449_v54 }
0x13a9   :  { %v1451_v24 = vadd.f32 %v1819_v51, %v1450_v31 }
0x13ab   :  { %v1455_v45 = vsel %vm1454_vm13, %v1819_v51, %v1451_v24 }
0x13ac   :  { %v1460_v4 = vsel %vm1457_vm14, %v1459_v46, %v1455_v45 }
0x13ad   :  { %v1463_v6 = vmul.f32 %v1460_v4, %v1320_v58 }
0x13f2   :  { %v1466_v25 = vpop.permute.xlu2 %1465 }
0x13f3   :  { %v1468_v47 = vmul.f32 %v1466_v25, %v1460_v4 }
0x13f5   :  { %1470 = vrot.lane.b32.xlu0 %v1468_v47, %s2111_s2 }
0x13fa   :  { %v1535_v26 = vpop.permute.xlu2 %1534 }
0x13fb   :  { %1669 = vmatmul.msk.f32.vlgmr.msrb.gmra.mxu3 %vm257_vm3, %v1535_v26 }
0x1467   :  { %v1471_v53 = vpop.permute.xlu0 %1470 }
0x1468   :  { %v1473_v27 = vadd.f32 %v1471_v53, %v1463_v6 }
0x146a   :  { %1820 = vtanh.f32 %v1473_v27 }
0x1470   :  { %v1821_v7 = vpop.eup %1820 }
0x1471   :  { %1476 = vrot.lane.b32.xlu1 %v1821_v7, %s2111_s2 }
0x1479   :  { %1480 = vrot.lane.b32.xlu1 %v1390_v41, %s2113_s5 }
0x147e   :  { %v1559_v21 = vpop.f32.mrf.mxu3 }
0x147f   :  { %v1560_v32 = vadd.f32 %v1691_v48, %v1559_v21 }
0x1481   :  { %1565 = vst [vmem:[#allocation16] sm:$0xff] %v1560_v32  ;;  %1498 = vrot.lane.b32.xlu1 %v1473_v27, %s2112_s18 }
0x14e3   :  { %v1477_v33 = vpop.permute.xlu1 %1476 }
0x14e4   :  { %v1479_v34 = vmul.f32 %v1477_v33, %v1460_v4 }
0x14e6   :  { %v1513_v35 = vrot.slane %v1479_v34, 2  ;;  %1491 = vrot.lane.b32.xlu2 %v1479_v34, %s2113_s5 }
0x14e8   :  { %v1523_v15 = vsel %vm1519_vm12, %v1522_v62, %v1513_v35 }
0x14e9   :  { %1536 = vrot.lane.b32.xlu0 %v1523_v15, %s2113_s5 }
0x14eb   :  { %v1481_v61 = vpop.permute.xlu1 %1480 }
0x14ec   :  { %1484 = vst.msk [vmem:[#allocation17 - $0x6] sm:$0xc0] %vm1483_vm15, %v1481_v61 }
0x14f1   :  { %1486 = vrot.lane.b32.xlu0 %v2560_v43, %s2112_s18 }
0x14f3   :  { %v1499_v36 = vpop.permute.xlu1 %1498 }
0x14f4   :  { %1502 = vst.msk [vmem:[#allocation19 + $0x2] sm:$0x3] %vm1495_vm0, %v1499_v36 }
0x1540   :  { %v1492_v37 = vpop.permute.xlu2 %1491 }
0x1541   :  { %1496 = vst.msk [vmem:[#allocation17 + $0x2] sm:$0x3] %vm1495_vm0, %v1492_v37 }
0x1542   :  { %1592 = dma.vmem_to_hbm [thread:$0]  %s1585_s25, 64, %s1587_s4, [#allocation18], %s2111_s2, %s2111_s2, %s2115_s3  }
0x155b   :  { %v1537_v38 = vpop.permute.xlu0 %1536 }
0x155c   :  { %1670 = vmatmul.msk.f32.gmra.mxu3 %vm257_vm3, %v1537_v38 }
0x1563   :  { %v1487_v39 = vpop.permute.xlu0 %1486 }
0x1564   :  { %1489 = vst.msk [vmem:[#allocation19 - $0x6] sm:$0xc0] %vm1483_vm15, %v1487_v39 }
0x1565   :  { %1605 = dma.vmem_to_hbm [thread:$0]  %s1598_s30, 64, %s1600_s28, [#allocation18], %s2111_s2, %s2111_s2, %s2115_s3  }
0x15df   :  { %v1562_v40 = vpop.f32.mrf.mxu3 }
0x15e0   :  { %v1563_v42 = vadd.f32 %v1691_v48, %v1562_v40 }
0x15e2   :  { %1566 = vst [vmem:[#allocation16 + $0x8] sm:$0xff] %v1563_v42 }
0x15e3   :  { %1579 = dma.vmem_to_hbm [thread:$0]  %s1572_s15, 256, %s1574_s7, [#allocation4], %s2102_s21, %s2102_s21, %s2103_s22  }
0x15e4   :  { %2097 = dma.done.wait [#allocation4], 256  }
0x15e5   :  { %2098 = vsyncadd [#allocation4], 4294967040 }
0x15e6   :  { %2099 = dma.done.wait [#allocation18], 128  }
0x15e7   :  { %2100 = vsyncadd [#allocation18], 4294967168 }
0x15e8   :  { %1618 = vsyncpa [#allocation3], 1 }
0x15e9   :  { %1619 = vsyncpa [#allocation6], 1 }
0x15ea   :  { %1620 = vsyncpa [#allocation9], 1 }
0x15eb   :  { %1621 = vsyncpa [#allocation12], 1 }
0x15ec   :  { %1622 = vsyncpa [#allocation15], 1 }
0x15ed   :  { %1623 = vsyncpa [#allocation4], 1 }
0x15ee   :  { %1624 = vsyncpa [#allocation18], 1 }

</bundles_post_ra>
